<compile_context>
chip_gen: v5e
topology: v5e:2x2
jax: 0.10.0
libtpu: 0.0.40
codegen_flags: <defaults>
</compile_context>

<pallas_src>
import jax
import jax.numpy as jnp
from jax.experimental import pallas as pl
from jax.experimental.pallas import tpu as pltpu


# ---------------- fused Pallas kernel ----------------

def _make_fused_kernel(H, W):
    HW = H * W

    def kernel(w_ref, x_ref, o_ref):
        # w_ref: (1, 4*CPB, Cin_pad)  rows ordered (g = ki*2+kj, local co)
        # x_ref: (Cin_pad, H*W)       lane axis = flattened (i, j)
        # o_ref: (4, CPB, H*W)        pooled output in the parity domain
        cpb = o_ref.shape[1]

        # --- ConvTranspose2d (no-overlap, k = stride = 2) as one MXU matmul ---
        acts = jnp.dot(w_ref[0], x_ref[...], preferred_element_type=jnp.float32)
        acts = jnp.maximum(acts, 0.0)                      # ReLU

        # parity planes: y_{ki,kj}[cl, i*W+j] = relu(deconv)[co, 2i+ki, 2j+kj]
        y00 = acts[0 * cpb:1 * cpb, :]   # ki=0, kj=0
        y01 = acts[1 * cpb:2 * cpb, :]   # ki=0, kj=1
        y10 = acts[2 * cpb:3 * cpb, :]   # ki=1, kj=0
        y11 = acts[3 * cpb:4 * cpb, :]   # ki=1, kj=1

        # --- hoisted 1-D edge masks over flattened lane index p = i*W + j ---
        lane = jax.lax.broadcasted_iota(jnp.int32, (1, HW), 1)
        col = lane % W
        not_j_lo = (col != 0).astype(jnp.float32)        # kills wrap into j == 0
        not_j_hi = (col != W - 1).astype(jnp.float32)    # kills wrap into j == W-1
        not_i_lo = (lane >= W).astype(jnp.float32)       # kills wrap into i == 0
        not_i_hi = (lane < HW - W).astype(jnp.float32)   # kills wrap into i == H-1

        def left(v):   # value at (i, j-1); 0 where j == 0
            return pltpu.roll(v, shift=1, axis=1) * not_j_lo

        def right(v):  # value at (i, j+1); 0 where j == W-1
            return pltpu.roll(v, shift=HW - 1, axis=1) * not_j_hi

        def up(v):     # value at (i-1, j); 0 where i == 0
            return pltpu.roll(v, shift=W, axis=1) * not_i_lo

        def down(v):   # value at (i+1, j); 0 where i == H-1
            return pltpu.roll(v, shift=HW - W, axis=1) * not_i_hi

        # --- separable 3x3 max-pool: W pass (within each output-row parity) ---
        wp00 = jnp.maximum(jnp.maximum(left(y01), y00), y01)    # ki=0, even wo
        wp01 = jnp.maximum(jnp.maximum(y00, y01), right(y00))   # ki=0, odd  wo
        wp10 = jnp.maximum(jnp.maximum(left(y11), y10), y11)    # ki=1, even wo
        wp11 = jnp.maximum(jnp.maximum(y10, y11), right(y10))   # ki=1, odd  wo

        # --- H pass (combines the two row parities) ---
        o_ref[0] = jnp.maximum(jnp.maximum(up(wp10), wp00), wp10)    # even ho, even wo
        o_ref[1] = jnp.maximum(jnp.maximum(up(wp11), wp01), wp11)    # even ho, odd  wo
        o_ref[2] = jnp.maximum(jnp.maximum(wp00, wp10), down(wp00))  # odd  ho, even wo
        o_ref[3] = jnp.maximum(jnp.maximum(wp01, wp11), down(wp01))  # odd  ho, odd  wo

    return kernel


# ---------------- wrapper ----------------

def model_forward(x, w):
    """x: (1, Cin, H, W) NCHW float32; w: (Cin, Cout, 2, 2) ConvTranspose2d weight."""
    N, Cin, H, W = x.shape
    Cin_w, Cout, kH, kW = w.shape
    assert N == 1 and Cin == Cin_w and (kH, kW) == (2, 2)

    Cin_pad = 8
    HW = H * W
    CB = 2                      # channel blocks (grid / megacore split)
    CPB = Cout // CB            # output channels per block

    # input packing: (Cin_pad, H*W) with the flattened (i, j) grid on lanes
    x_r = jnp.pad(x[0].reshape(Cin, HW).astype(jnp.float32),
                  ((0, Cin_pad - Cin), (0, 0)))

    # weight packing: (CB, 4*CPB, Cin_pad), rows ordered (g = ki*2+kj, local co)
    wt = jnp.transpose(w.astype(jnp.float32), (1, 2, 3, 0))         # (Cout, kH, kW, Cin)
    wt = jnp.pad(wt, ((0, 0), (0, 0), (0, 0), (0, Cin_pad - Cin)))  # (Cout, kH, kW, 8)
    w_r = wt.reshape(CB, CPB, kH * kW, Cin_pad)                     # (cb, cl, g, ci)
    w_r = jnp.transpose(w_r, (0, 2, 1, 3)).reshape(CB, kH * kW * CPB, Cin_pad)

    outk = pl.pallas_call(
        _make_fused_kernel(H, W),
        out_shape=jax.ShapeDtypeStruct((kH * kW, Cout, HW), jnp.float32),
        grid=(CB,),
        in_specs=[pl.BlockSpec((1, kH * kW * CPB, Cin_pad), lambda cb: (cb, 0, 0)),
                  pl.BlockSpec((Cin_pad, HW), lambda cb: (0, 0))],
        out_specs=pl.BlockSpec((kH * kW, CPB, HW), lambda cb: (0, cb, 0)),
        compiler_params=pltpu.CompilerParams(
            dimension_semantics=("parallel",)),
    )(w_r, x_r)

    # parity -> NCHW: outk[ki*2+kj, co, i*W+j] -> (1, Cout, 2H, 2W)
    out = outk.reshape(kH, kW, Cout, H, W)
    out = jnp.transpose(out, (2, 3, 0, 4, 1)).reshape(Cout, kH * H, kW * W)
    return out[None]


# ---------------- plain-JAX reference (for correctness check) ----------------

def reference(x, w):
    # ConvTranspose2d(stride=2, k=2, pad=0, no bias): non-overlapping scatter
    y = jnp.einsum('cij,cokl->oikjl', x[0], w)            # (Cout, H, kH, W, kW)
    Cout = w.shape[1]
    y = y.reshape(Cout, x.shape[2] * 2, x.shape[3] * 2)   # (Cout, 64, 64)
    z = jnp.maximum(y, 0.0)
    pooled = jax.lax.reduce_window(
        z, -jnp.inf, jax.lax.max,
        window_dimensions=(1, 3, 3), window_strides=(1, 1, 1),
        padding=((0, 0), (1, 1), (1, 1)))
    return pooled[None]


if __name__ == "__main__":
    key = jax.random.PRNGKey(0)
    kx, kw = jax.random.split(key)
    # deterministic inputs / parameters (ConvTranspose2d weight: (Cin, Cout, kH, kW))
    x = jax.random.normal(kx, (1, 6, 32, 32), dtype=jnp.float32)
    w = jax.random.normal(kw, (6, 16, 2, 2), dtype=jnp.float32) * 0.2

    fwd = jax.jit(model_forward)
    out = fwd(x, w)
    jax.block_until_ready(out)

    ref = reference(x, w)
    assert out.shape == (1, 16, 64, 64), out.shape
    max_err = float(jnp.max(jnp.abs(out - ref)))
    assert jnp.allclose(out, ref, atol=1e-4, rtol=1e-4), max_err
    print("KERNEL_OK")
</pallas_src>

<mosaic_0001>
module attributes {stable_mosaic.version = 11 : i64} {
  func.func @kernel(%arg0: i32, %arg1: memref<1x32x8xf32, #tpu.memory_space<vmem>>, %arg2: memref<8x1024xf32, #tpu.memory_space<vmem>>, %arg3: memref<4x8x1024xf32, #tpu.memory_space<vmem>>) attributes {dimension_semantics = [#tpu.dimension_semantics<parallel>], iteration_bounds = array<i64: 2>, scalar_prefetch = 0 : i64, scratch_operands = 0 : i64, tpu.core_type = #tpu.core_type<tc>, window_params = [{transform_indices = @transform_0, window_bounds = array<i64: 1, 32, 8>}, {pipeline_mode = #tpu.pipeline_mode<synchronous>, transform_indices = @transform_1, window_bounds = array<i64: 8, 1024>}, {transform_indices = @transform_2, window_bounds = array<i64: 4, 8, 1024>}]} {
    %c0 = arith.constant 0 : index
    %c0_0 = arith.constant 0 : index
    %c0_1 = arith.constant 0 : index
    %0 = vector.load %arg1[%c0, %c0_0, %c0_1] : memref<1x32x8xf32, #tpu.memory_space<vmem>>, vector<1x32x8xf32>
    %1 = vector.shape_cast %0 : vector<1x32x8xf32> to vector<32x8xf32>
    %c0_2 = arith.constant 0 : index
    %c0_3 = arith.constant 0 : index
    %2 = vector.load %arg2[%c0_2, %c0_3] : memref<8x1024xf32, #tpu.memory_space<vmem>>, vector<8x1024xf32>
    %cst = arith.constant dense<0.000000e+00> : vector<32x1024xf32>
    %3 = tpu.matmul %1, %2, %cst {dimension_numbers = #tpu.dot_dimension_numbers<[1], [0], [0], [1], [0, 0, 1, 1], [], []>} : vector<32x8xf32>, vector<8x1024xf32>, vector<32x1024xf32> -> vector<32x1024xf32>
    %cst_4 = arith.constant 0.000000e+00 : f32
    %4 = vector.broadcast %cst_4 : f32 to vector<32x1024xf32>
    %5 = arith.maximumf %3, %4 : vector<32x1024xf32>
    %6 = vector.extract_strided_slice %5 {offsets = [0, 0], sizes = [8, 1024], strides = [1, 1]} : vector<32x1024xf32> to vector<8x1024xf32>
    %7 = vector.extract_strided_slice %5 {offsets = [8, 0], sizes = [8, 1024], strides = [1, 1]} : vector<32x1024xf32> to vector<8x1024xf32>
    %8 = vector.extract_strided_slice %5 {offsets = [16, 0], sizes = [8, 1024], strides = [1, 1]} : vector<32x1024xf32> to vector<8x1024xf32>
    %9 = vector.extract_strided_slice %5 {offsets = [24, 0], sizes = [8, 1024], strides = [1, 1]} : vector<32x1024xf32> to vector<8x1024xf32>
    %10 = tpu.iota {dimensions = array<i32: 1>} : vector<1x1024xi32>
    %c32_i32 = arith.constant 32 : i32
    %c0_i32 = arith.constant 0 : i32
    %11 = arith.cmpi eq, %c32_i32, %c0_i32 : i32
    %c1_i32 = arith.constant 1 : i32
    %12 = arith.select %11, %c1_i32, %c32_i32 : i32
    %13 = vector.broadcast %12 : i32 to vector<1x1024xi32>
    %14 = arith.remsi %10, %13 : vector<1x1024xi32>
    %c0_i32_5 = arith.constant 0 : i32
    %15 = vector.broadcast %c0_i32_5 : i32 to vector<1x1024xi32>
    %16 = arith.cmpi ne, %14, %15 : vector<1x1024xi32>
    %c0_i32_6 = arith.constant 0 : i32
    %17 = vector.broadcast %c0_i32_6 : i32 to vector<1x1024xi32>
    %18 = arith.cmpi slt, %14, %17 : vector<1x1024xi32>
    %c0_i32_7 = arith.constant 0 : i32
    %19 = arith.cmpi slt, %12, %c0_i32_7 : i32
    %20 = vector.broadcast %19 : i1 to vector<1x1024xi1>
    %21 = vector.broadcast %20 : vector<1x1024xi1> to vector<1x1024xi1>
    %22 = arith.xori %18, %21 : vector<1x1024xi1>
    %23 = arith.andi %22, %16 : vector<1x1024xi1>
    %24 = vector.broadcast %12 : i32 to vector<1x1024xi32>
    %25 = arith.addi %14, %24 : vector<1x1024xi32>
    %26 = arith.select %23, %25, %14 : vector<1x1024xi1>, vector<1x1024xi32>
    %c0_i32_8 = arith.constant 0 : i32
    %27 = vector.broadcast %c0_i32_8 : i32 to vector<1x1024xi32>
    %28 = arith.cmpi ne, %26, %27 : vector<1x1024xi32>
    %29 = arith.extui %28 : vector<1x1024xi1> to vector<1x1024xi32>
    %30 = arith.sitofp %29 : vector<1x1024xi32> to vector<1x1024xf32>
    %c31_i32 = arith.constant 31 : i32
    %31 = vector.broadcast %c31_i32 : i32 to vector<1x1024xi32>
    %32 = arith.cmpi ne, %26, %31 : vector<1x1024xi32>
    %33 = arith.extui %32 : vector<1x1024xi1> to vector<1x1024xi32>
    %34 = arith.sitofp %33 : vector<1x1024xi32> to vector<1x1024xf32>
    %c32_i32_9 = arith.constant 32 : i32
    %35 = vector.broadcast %c32_i32_9 : i32 to vector<1x1024xi32>
    %36 = arith.cmpi sge, %10, %35 : vector<1x1024xi32>
    %37 = arith.extui %36 : vector<1x1024xi1> to vector<1x1024xi32>
    %38 = arith.sitofp %37 : vector<1x1024xi32> to vector<1x1024xf32>
    %c992_i32 = arith.constant 992 : i32
    %39 = vector.broadcast %c992_i32 : i32 to vector<1x1024xi32>
    %40 = arith.cmpi slt, %10, %39 : vector<1x1024xi32>
    %41 = arith.extui %40 : vector<1x1024xi1> to vector<1x1024xi32>
    %42 = arith.sitofp %41 : vector<1x1024xi32> to vector<1x1024xf32>
    %c1_i32_10 = arith.constant 1 : i32
    %43 = tpu.dynamic_rotate %7 by %c1_i32_10 dim 1 : vector<8x1024xf32>, i32 -> vector<8x1024xf32>
    %44 = vector.broadcast %30 : vector<1x1024xf32> to vector<8x1024xf32>
    %45 = arith.mulf %43, %44 : vector<8x1024xf32>
    %46 = arith.maximumf %45, %6 : vector<8x1024xf32>
    %47 = arith.maximumf %46, %7 : vector<8x1024xf32>
    %48 = arith.maximumf %6, %7 : vector<8x1024xf32>
    %c1023_i32 = arith.constant 1023 : i32
    %49 = tpu.dynamic_rotate %6 by %c1023_i32 dim 1 : vector<8x1024xf32>, i32 -> vector<8x1024xf32>
    %50 = vector.broadcast %34 : vector<1x1024xf32> to vector<8x1024xf32>
    %51 = arith.mulf %49, %50 : vector<8x1024xf32>
    %52 = arith.maximumf %48, %51 : vector<8x1024xf32>
    %c1_i32_11 = arith.constant 1 : i32
    %53 = tpu.dynamic_rotate %9 by %c1_i32_11 dim 1 : vector<8x1024xf32>, i32 -> vector<8x1024xf32>
    %54 = vector.broadcast %30 : vector<1x1024xf32> to vector<8x1024xf32>
    %55 = arith.mulf %53, %54 : vector<8x1024xf32>
    %56 = arith.maximumf %55, %8 : vector<8x1024xf32>
    %57 = arith.maximumf %56, %9 : vector<8x1024xf32>
    %58 = arith.maximumf %8, %9 : vector<8x1024xf32>
    %c1023_i32_12 = arith.constant 1023 : i32
    %59 = tpu.dynamic_rotate %8 by %c1023_i32_12 dim 1 : vector<8x1024xf32>, i32 -> vector<8x1024xf32>
    %60 = vector.broadcast %34 : vector<1x1024xf32> to vector<8x1024xf32>
    %61 = arith.mulf %59, %60 : vector<8x1024xf32>
    %62 = arith.maximumf %58, %61 : vector<8x1024xf32>
    %c32_i32_13 = arith.constant 32 : i32
    %63 = tpu.dynamic_rotate %57 by %c32_i32_13 dim 1 : vector<8x1024xf32>, i32 -> vector<8x1024xf32>
    %64 = vector.broadcast %38 : vector<1x1024xf32> to vector<8x1024xf32>
    %65 = arith.mulf %63, %64 : vector<8x1024xf32>
    %66 = arith.maximumf %65, %47 : vector<8x1024xf32>
    %67 = arith.maximumf %66, %57 : vector<8x1024xf32>
    %c0_14 = arith.constant 0 : index
    %c0_15 = arith.constant 0 : index
    %c0_16 = arith.constant 0 : index
    %68 = vector.load %arg3[%c0_14, %c0_15, %c0_16] : memref<4x8x1024xf32, #tpu.memory_space<vmem>>, vector<1x8x1024xf32>
    %69 = vector.shape_cast %68 : vector<1x8x1024xf32> to vector<8x1024xf32>
    %70 = vector.shape_cast %67 : vector<8x1024xf32> to vector<1x8x1024xf32>
    tpu.vector_store %arg3[%c0_14, %c0_15, %c0_16], %70 {strides = array<i32>} : memref<4x8x1024xf32, #tpu.memory_space<vmem>>, vector<1x8x1024xf32>,
    %c32_i32_17 = arith.constant 32 : i32
    %71 = tpu.dynamic_rotate %62 by %c32_i32_17 dim 1 : vector<8x1024xf32>, i32 -> vector<8x1024xf32>
    %72 = vector.broadcast %38 : vector<1x1024xf32> to vector<8x1024xf32>
    %73 = arith.mulf %71, %72 : vector<8x1024xf32>
    %74 = arith.maximumf %73, %52 : vector<8x1024xf32>
    %75 = arith.maximumf %74, %62 : vector<8x1024xf32>
    %c1 = arith.constant 1 : index
    %c0_18 = arith.constant 0 : index
    %c0_19 = arith.constant 0 : index
    %76 = vector.load %arg3[%c1, %c0_18, %c0_19] : memref<4x8x1024xf32, #tpu.memory_space<vmem>>, vector<1x8x1024xf32>
    %77 = vector.shape_cast %76 : vector<1x8x1024xf32> to vector<8x1024xf32>
    %78 = vector.shape_cast %75 : vector<8x1024xf32> to vector<1x8x1024xf32>
    tpu.vector_store %arg3[%c1, %c0_18, %c0_19], %78 {strides = array<i32>} : memref<4x8x1024xf32, #tpu.memory_space<vmem>>, vector<1x8x1024xf32>,
    %79 = arith.maximumf %47, %57 : vector<8x1024xf32>
    %c992_i32_20 = arith.constant 992 : i32
    %80 = tpu.dynamic_rotate %47 by %c992_i32_20 dim 1 : vector<8x1024xf32>, i32 -> vector<8x1024xf32>
    %81 = vector.broadcast %42 : vector<1x1024xf32> to vector<8x1024xf32>
    %82 = arith.mulf %80, %81 : vector<8x1024xf32>
    %83 = arith.maximumf %79, %82 : vector<8x1024xf32>
    %c2 = arith.constant 2 : index
    %c0_21 = arith.constant 0 : index
    %c0_22 = arith.constant 0 : index
    %84 = vector.load %arg3[%c2, %c0_21, %c0_22] : memref<4x8x1024xf32, #tpu.memory_space<vmem>>, vector<1x8x1024xf32>
    %85 = vector.shape_cast %84 : vector<1x8x1024xf32> to vector<8x1024xf32>
    %86 = vector.shape_cast %83 : vector<8x1024xf32> to vector<1x8x1024xf32>
    tpu.vector_store %arg3[%c2, %c0_21, %c0_22], %86 {strides = array<i32>} : memref<4x8x1024xf32, #tpu.memory_space<vmem>>, vector<1x8x1024xf32>,
    %87 = arith.maximumf %52, %62 : vector<8x1024xf32>
    %c992_i32_23 = arith.constant 992 : i32
    %88 = tpu.dynamic_rotate %52 by %c992_i32_23 dim 1 : vector<8x1024xf32>, i32 -> vector<8x1024xf32>
    %89 = vector.broadcast %42 : vector<1x1024xf32> to vector<8x1024xf32>
    %90 = arith.mulf %88, %89 : vector<8x1024xf32>
    %91 = arith.maximumf %87, %90 : vector<8x1024xf32>
    %c3 = arith.constant 3 : index
    %c0_24 = arith.constant 0 : index
    %c0_25 = arith.constant 0 : index
    %92 = vector.load %arg3[%c3, %c0_24, %c0_25] : memref<4x8x1024xf32, #tpu.memory_space<vmem>>, vector<1x8x1024xf32>
    %93 = vector.shape_cast %92 : vector<1x8x1024xf32> to vector<8x1024xf32>
    %94 = vector.shape_cast %91 : vector<8x1024xf32> to vector<1x8x1024xf32>
    tpu.vector_store %arg3[%c3, %c0_24, %c0_25], %94 {strides = array<i32>} : memref<4x8x1024xf32, #tpu.memory_space<vmem>>, vector<1x8x1024xf32>,
    return
  }
  func.func @transform_0(%arg0: i32) -> (i32, i32, i32) {
    %c0_i32 = arith.constant 0 : i32
    %c0_i32_0 = arith.constant 0 : i32
    %c0_i32_1 = arith.constant 0 : i32
    return %arg0, %c0_i32, %c0_i32_0 : i32, i32, i32
  }
  func.func @transform_1(%arg0: i32) -> (i32, i32) {
    %c0_i32 = arith.constant 0 : i32
    %c0_i32_0 = arith.constant 0 : i32
    %c0_i32_1 = arith.constant 0 : i32
    return %c0_i32, %c0_i32_0 : i32, i32
  }
  func.func @transform_2(%arg0: i32) -> (i32, i32, i32) {
    %c0_i32 = arith.constant 0 : i32
    %c0_i32_0 = arith.constant 0 : i32
    %c0_i32_1 = arith.constant 0 : i32
    return %c0_i32, %arg0, %c0_i32_0 : i32, i32, i32
  }
}

</mosaic_0001>

<bundles_post_ra>
// kernel: squeeze.1
= control target key start
LH: loop header
LB: loop body
LE: loop exit
PB: predicated region body
PF: predicated region fallthrough
CT: control target
= control target key end

     0   :  { %2 = vsyncpa [#allocation1], 0  ;;  %s736_s8 = smov [#allocation0]   ;;  %s1089_s0 = inlined_call_operand.hbm [shape: f32[1,6,32,32], index: 0, kind: input, shape index: {}]   ;;  %s1090_s1 = inlined_call_operand.vmem [shape: f32[6,1024], index: 1, kind: output, shape index: {}]  }
   0x1   :  { %s6_s0 = sshll.u32 %s1089_s0, 4  ;;  %s8_s9 = sshll.u32 %s736_s8, 4  ;;  %s7_s0 = int_to_ptr.hbm [resolvable:$true] %s6_s0  ;;  %s9_s9 = int_to_ptr.vmem [resolvable:$true] %s8_s9 }
   0x2   :  { %11 = dma.hbm_to_vmem [thread:$0]  %s7_s0, 3072, %s9_s9, [#allocation1]  }
   0x3   :  { %734 = dma.done.wait [#allocation1], 3072  }
   0x4   :  { %735 = vsyncadd [#allocation1], 4294964224  ;;  %vm57_vm0 = vcmask 1041409   ;;  %vm61_vm1 = vcmask 1042434   ;;  %vm78_vm2 = vcmask 1047559   ;;  %s131_s10 = smov 24 }
   0x5   :  { %vm133_vm3 = vcmask 1044483   ;;  %vm137_vm4 = vcmask 1045509   ;;  %s72_s11 = smov 96  ;;  %vm141_vm5 = vcmask 1046534   ;;  %vm65_vm6 = vcmask 1043459   ;;  %s165_s12 = smov 24 }
   0x6   :  { %vm69_vm7 = vcmask 1044484   ;;  %vm74_vm8 = vcmask 1046533   ;;  %s753_s13 = smov 96  ;;  %v121_v0 = vld [vmem:[#allocation0 + $0x47] sm:$0x1]   ;;  %vm193_vm9 = vcmask 1042433  }
   0x7   :  { %v123_v1 = vld [vmem:[#allocation0 + $0x66] sm:$0x2]   ;;  %v136_v5 = vld [vmem:[#allocation0 + $0x26] sm:$0x20]   ;;  %v54_v9 = vld [vmem:[#allocation0 + $0x3] sm:$0x1]  }
   0x8   :  { %v127_v2 = vld [vmem:[#allocation0 + $0x85] sm:$0x4]   ;;  %v125_v3 = vsel %vm57_vm0, %v123_v1, %v121_v0  ;;  %v140_v6 = vld [vmem:[#allocation0 + $0x45] sm:$0x40]   ;;  %v56_v10 = vld [vmem:[#allocation0 + $0x22] sm:$0x2]  }
   0x9   :  { %v132_v4 = vld [vmem:[#allocation0 + $0x27b] ss:$-156 sm:%s131_s10]   ;;  %v129_v7 = vsel %vm61_vm1, %v127_v2, %v125_v3  ;;  %v58_v12 = vsel %vm57_vm0, %v56_v10, %v54_v9  ;;  %s766_s14 = smov 96  ;;  %s768_s15 = smov 96  ;;  %v290_v45 = vld [vmem:[#allocation0 + $0x12] sm:$0x1]  }
   0xa   :  { %v144_v8 = vld [vmem:[#allocation0 + $0x64] sm:$0x80]   ;;  %v134_v11 = vsel %vm133_vm3, %v132_v4, %v129_v7  ;;  %v60_v13 = vld [vmem:[#allocation0 + $0x41] sm:$0x4]   ;;  %v77_v19 = vld [vmem:[#allocation0 + $0x20] sm:$0x80]  }
   0xb   :  { %v64_v14 = vld [vmem:[#allocation0 + $0x60] sm:$0x8]   ;;  %v138_v16 = vsel %vm137_vm4, %v136_v5, %v134_v11  ;;  %v62_v17 = vsel %vm61_vm1, %v60_v13, %v58_v12  ;;  %v155_v20 = vld [vmem:[#allocation0 + $0x57] sm:$0x1]   ;;  %v170_v29 = vld [vmem:[#allocation0 + $0x36] sm:$0x20]  }
   0xc   :  { %v68_v15 = vld [vmem:[#allocation0 + $0x7f] sm:$0x10]   ;;  %v142_v21 = vsel %vm141_vm5, %v140_v6, %v138_v16  ;;  %v66_v22 = vsel %vm65_vm6, %v64_v14, %v62_v17  ;;  %v157_v23 = vld [vmem:[#allocation0 + $0x76] sm:$0x2]   ;;  %v174_v30 = vld [vmem:[#allocation0 + $0x55] sm:$0x40]  }
   0xd   :  { %v73_v18 = vld [vmem:[#allocation0 + $0x3af] ss:$-156 sm:%s72_s11]   ;;  %v146_v26 = vsel %vm78_vm2, %v144_v8, %v142_v21  ;;  %v70_v27 = vsel %vm69_vm7, %v68_v15, %v66_v22  ;;  %v159_v28 = vsel %vm57_vm0, %v157_v23, %v155_v20  ;;  %s737_s16 = smov 96   ;;  %v292_v46 = vld [vmem:[#allocation0 + $0x31] sm:$0x2]   ;;  %s191_s17 = smov 6 }
   0xe   :  { %v161_v24 = vld [vmem:[#allocation0 + $0x95] sm:$0x4]   ;;  %147 = vrot.lane.b32.xlu1 %v146_v26, %s737_s16  ;;  %v75_v31 = vsel %vm74_vm8, %v73_v18, %v70_v27  ;;  %v87_v33 = vld [vmem:[#allocation0 + $0x13] sm:$0x1]   ;;  %v178_v38 = vld [vmem:[#allocation0 + $0x74] sm:$0x80]   ;;  %v294_v49 = vsel %vm57_vm0, %v292_v46, %v290_v45 }
   0xf   :  { %v166_v25 = vld [vmem:[#allocation0 + $0x28b] ss:$-156 sm:%s165_s12]   ;;  %v163_v32 = vsel %vm61_vm1, %v161_v24, %v159_v28  ;;  %v79_v36 = vsel %vm78_vm2, %v77_v19, %v75_v31  ;;  %v296_v50 = vld [vmem:[#allocation0 + $0x50] sm:$0x4]   ;;  %s783_s18 = smov 6  ;;  %s792_s19 = smov 24 }
  0x10   :  { %v89_v34 = vld [vmem:[#allocation0 + $0x32] sm:$0x2]   ;;  %v168_v37 = vsel %vm133_vm3, %v166_v25, %v163_v32  ;;  %80 = vrot.lane.b32.xlu0 %v79_v36, %s737_s16  ;;  %v300_v51 = vld [vmem:[#allocation0 + $0x6f] sm:$0x8]   ;;  %v110_v53 = vld [vmem:[#allocation0 + $0x30] sm:$0x80]   ;;  %v298_v54 = vsel %vm61_vm1, %v296_v50, %v294_v49 }
  0x11   :  { %v93_v35 = vld [vmem:[#allocation0 + $0x51] sm:$0x4]   ;;  %v91_v39 = vsel %vm57_vm0, %v89_v34, %v87_v33  ;;  %v172_v42 = vsel %vm137_vm4, %v170_v29, %v168_v37  ;;  %v304_v55 = vld [vmem:[#allocation0 + $0x8e] sm:$0x10]   ;;  %v257_v56 = vld [vmem:[#allocation0 + $0x2] sm:$0x1]   ;;  %v302_v59 = vsel %vm65_vm6, %v300_v51, %v298_v54 }
  0x12   :  { %v97_v40 = vld [vmem:[#allocation0 + $0x70] sm:$0x8]   ;;  %v95_v43 = vsel %vm61_vm1, %v93_v35, %v91_v39  ;;  %v176_v47 = vsel %vm141_vm5, %v174_v30, %v172_v42  ;;  %v259_v60 = vld [vmem:[#allocation0 + $0x21] sm:$0x2]   ;;  %s794_s20 = smov 6  ;;  %v306_v3 = vsel %vm69_vm7, %v304_v55, %v302_v59  ;;  %s738_s21 = smov 64  }
  0x13   :  { %v101_v41 = vld [vmem:[#allocation0 + $0x8f] sm:$0x10]   ;;  %v99_v48 = vsel %vm65_vm6, %v97_v40, %v95_v43  ;;  %v180_v57 = vsel %vm78_vm2, %v178_v38, %v176_v47  ;;  %v263_v61 = vld [vmem:[#allocation0 + $0x40] sm:$0x4]   ;;  %v261_v0 = vsel %vm57_vm0, %v259_v60, %v257_v56  ;;  %v189_v5 = vld [vmem:[#allocation0 + $0x8b] sm:$0x1]  }
  0x14   :  { %v106_v44 = vld [vmem:[#allocation0 + $0x3bf] ss:$-156 sm:%s753_s13]   ;;  %v103_v52 = vsel %vm69_vm7, %v101_v41, %v99_v48  ;;  %v267_v62 = vld [vmem:[#allocation0 + $0x5f] sm:$0x8]   ;;  %v265_v4 = vsel %vm61_vm1, %v263_v61, %v261_v0  ;;  %v313_v8 = vld [vmem:[#allocation0 + $0x2f] sm:$0x80]  }
  0x15   :  { %v108_v58 = vsel %vm74_vm8, %v106_v44, %v103_v52  ;;  %v309_v63 = vld [vmem:[#allocation0 + $0x3be] ss:$-156 sm:%s766_s14]   ;;  %v192_v6 = vld [vmem:[#allocation0 + $0x147] ss:$-156 sm:%s191_s17]   ;;  %v269_v9 = vsel %vm65_vm6, %v267_v62, %v265_v4  ;;  %v493_v54 = vld [vmem:[#allocation0 + $0x11] sm:$0x1]  }
  0x16   :  { %v271_v1 = vld [vmem:[#allocation0 + $0x7e] sm:$0x10]   ;;  %v112_v2 = vsel %vm78_vm2, %v110_v53, %v108_v58  ;;  %v196_v7 = vld [vmem:[#allocation0 + $0x2c] sm:$0x8]   ;;  %181 = vrot.lane.b32.xlu1 %v180_v57, %s737_s16  ;;  %v194_v11 = vsel %vm193_vm9, %v192_v6, %v189_v5  ;;  %v392_v17 = vld [vmem:[#allocation0 + $0x8a] sm:$0x1]   ;;  %v311_v19 = vsel %vm74_vm8, %v309_v63, %v306_v3 }
  0x17   :  { %v276_v10 = vld [vmem:[#allocation0 + $0x3ae] ss:$-156 sm:%s768_s15]   ;;  %v200_v12 = vld [vmem:[#allocation0 + $0x4b] sm:$0x10]   ;;  %v273_v14 = vsel %vm69_vm7, %v271_v1, %v269_v9  ;;  %v198_v15 = vsel %vm65_vm6, %v196_v7, %v194_v11  ;;  %v315_v36 = vsel %vm78_vm2, %v313_v8, %v311_v19  ;;  %v223_v42 = vld [vmem:[#allocation0 + $0x9b] sm:$0x1]  }
  0x18   :  { %v204_v13 = vld [vmem:[#allocation0 + $0x6a] sm:$0x20]   ;;  %v395_v18 = vld [vmem:[#allocation0 + $0x146] ss:$-156 sm:%s783_s18]   ;;  %113 = vrot.lane.b32.xlu0 %v112_v2, %s737_s16  ;;  %v202_v20 = vsel %vm69_vm7, %v200_v12, %v198_v15  ;;  %v278_v30 = vsel %vm74_vm8, %v276_v10, %v273_v14  ;;  %v230_v44 = vld [vmem:[#allocation0 + $0x3c] sm:$0x8]  }
  0x19   :  { %v208_v16 = vld [vmem:[#allocation0 + $0x89] sm:$0x40]   ;;  %v397_v22 = vsel %vm193_vm9, %v395_v18, %v392_v17  ;;  %v399_v23 = vld [vmem:[#allocation0 + $0x2b] sm:$0x8]   ;;  %v280_v25 = vld [vmem:[#allocation0 + $0x1f] sm:$0x80]   ;;  %v206_v26 = vsel %vm137_vm4, %v204_v13, %v202_v20 }
  0x1a   :  { %v212_v21 = vld [vmem:[#allocation0 + $0xa8] sm:$0x80]   ;;  %v403_v24 = vld [vmem:[#allocation0 + $0x4a] sm:$0x10]   ;;  %v401_v27 = vsel %vm65_vm6, %v399_v23, %v397_v22  ;;  %v358_v29 = vld [vmem:[#allocation0 + $0x56] sm:$0x1]   ;;  %v210_v31 = vsel %vm141_vm5, %v208_v16, %v206_v26  ;;  %v282_v45 = vsel %vm78_vm2, %v280_v25, %v278_v30 }
  0x1b   :  { %v407_v28 = vld [vmem:[#allocation0 + $0x69] sm:$0x20]   ;;  %v405_v32 = vsel %vm69_vm7, %v403_v24, %v401_v27  ;;  %v360_v33 = vld [vmem:[#allocation0 + $0x75] sm:$0x2]   ;;  %v214_v37 = vsel %vm78_vm2, %v212_v21, %v210_v31  ;;  %v373_v40 = vld [vmem:[#allocation0 + $0x35] sm:$0x20]  }
  0x1c   :  { %v364_v34 = vld [vmem:[#allocation0 + $0x94] sm:$0x4]   ;;  %v411_v38 = vld [vmem:[#allocation0 + $0x88] sm:$0x40]   ;;  %v362_v39 = vsel %vm57_vm0, %v360_v33, %v358_v29  ;;  %215 = vrot.lane.b32.xlu2 %v214_v37, %s737_s16  ;;  %v226_v43 = vld [vmem:[#allocation0 + $0x157] ss:$-156 sm:%s794_s20]   ;;  %v409_v46 = vsel %vm137_vm4, %v407_v28, %v405_v32 }
  0x1d   :  { %v369_v35 = vld [vmem:[#allocation0 + $0x28a] ss:$-156 sm:%s792_s19]   ;;  %v366_v41 = vsel %vm61_vm1, %v364_v34, %v362_v39  ;;  %v228_v49 = vsel %vm193_vm9, %v226_v43, %v223_v42  ;;  %v234_v50 = vld [vmem:[#allocation0 + $0x5b] sm:$0x10]   ;;  %v495_v55 = vld [vmem:[#allocation0 + $0x30] sm:$0x2]   ;;  %v413_v62 = vsel %vm141_vm5, %v411_v38, %v409_v46 }
  0x1e   :  { %v371_v47 = vsel %vm133_vm3, %v369_v35, %v366_v41  ;;  %v377_v48 = vld [vmem:[#allocation0 + $0x54] sm:$0x40]   ;;  %v238_v51 = vld [vmem:[#allocation0 + $0x7a] sm:$0x20]   ;;  %316 = vrot.lane.b32.xlu1 %v315_v36, %s738_s21  ;;  %v232_v52 = vsel %vm65_vm6, %v230_v44, %v228_v49  ;;  %v497_v59 = vsel %vm57_vm0, %v495_v55, %v493_v54  ;;  %v499_v60 = vld [vmem:[#allocation0 + $0x4f] sm:$0x4]  }
  0x1f   :  { %v242_v53 = vld [vmem:[#allocation0 + $0x99] sm:$0x40]   ;;  %v375_v56 = vsel %vm137_vm4, %v373_v40, %v371_v47  ;;  %v236_v57 = vsel %vm69_vm7, %v234_v50, %v232_v52  ;;  %v503_v61 = vld [vmem:[#allocation0 + $0x6e] sm:$0x8]   ;;  %v415_v63 = vld [vmem:[#allocation0 + $0xa7] sm:$0x80]   ;;  %v501_v1 = vsel %vm61_vm1, %v499_v60, %v497_v59 }
  0x20   :  { %v246_v58 = vld [vmem:[#allocation0 + $0xb8] sm:$0x80]   ;;  %283 = vrot.lane.b32.xlu0 %v282_v45, %s738_s21  ;;  %v240_v0 = vsel %vm137_vm4, %v238_v51, %v236_v57  ;;  %s511_s22 = smov 96  ;;  %v460_v2 = vld [vmem:[#allocation0 + $0x1] sm:$0x1]   ;;  %v379_v7 = vsel %vm141_vm5, %v377_v48, %v375_v56  ;;  %v505_v9 = vsel %vm65_vm6, %v503_v61, %v501_v1  ;;  %s478_s23 = smov 96  ;;  %v417_v13 = vsel %vm78_vm2, %v415_v63, %v413_v62 }
  0x21   :  { %v381_v3 = vld [vmem:[#allocation0 + $0x73] sm:$0x80]   ;;  %v244_v4 = vsel %vm141_vm5, %v242_v53, %v240_v0  ;;  %v462_v5 = vld [vmem:[#allocation0 + $0x20] sm:$0x2]   ;;  %v507_v10 = vld [vmem:[#allocation0 + $0x8d] sm:$0x10]  }
  0x22   :  { %v466_v6 = vld [vmem:[#allocation0 + $0x3f] sm:$0x4]   ;;  %v248_v8 = vsel %vm78_vm2, %v246_v58, %v244_v4  ;;  %v464_v11 = vsel %vm57_vm0, %v462_v5, %v460_v2  ;;  %v324_v17 = vld [vmem:[#allocation0 + $0x46] sm:$0x1]   ;;  %s334_s24 = smov 24  ;;  %s597_s25 = smov 6  ;;  %v383_v23 = vsel %vm78_vm2, %v381_v3, %v379_v7  ;;  %v509_v24 = vsel %vm69_vm7, %v507_v10, %v505_v9 }
  0x23   :  { %v470_v12 = vld [vmem:[#allocation0 + $0x5e] sm:$0x8]   ;;  %v468_v15 = vsel %vm61_vm1, %v466_v6, %v464_v11  ;;  %v326_v18 = vld [vmem:[#allocation0 + $0x65] sm:$0x2]   ;;  %v339_v22 = vld [vmem:[#allocation0 + $0x25] sm:$0x20]  }
  0x24   :  { %v512_v14 = vld [vmem:[#allocation0 + $0x3bd] ss:$-156 sm:%s511_s22]   ;;  %249 = vrot.lane.b32.xlu2 %v248_v8, %s737_s16  ;;  %v472_v19 = vsel %vm65_vm6, %v470_v12, %v468_v15  ;;  %v328_v20 = vsel %vm57_vm0, %v326_v18, %v324_v17  ;;  %v330_v21 = vld [vmem:[#allocation0 + $0x84] sm:$0x4]   ;;  %v343_v27 = vld [vmem:[#allocation0 + $0x44] sm:$0x40]  }
  0x25   :  { %v474_v16 = vld [vmem:[#allocation0 + $0x7d] sm:$0x10]   ;;  %v332_v25 = vsel %vm61_vm1, %v330_v21, %v328_v20  ;;  %v335_v26 = vld [vmem:[#allocation0 + $0x27a] ss:$-156 sm:%s334_s24]   ;;  %v595_v30 = vld [vmem:[#allocation0 + $0x89] sm:$0x1]   ;;  %v514_v38 = vsel %vm74_vm8, %v512_v14, %v509_v24 }
  0x26   :  { %v347_v28 = vld [vmem:[#allocation0 + $0x63] sm:$0x80]   ;;  %418 = vrot.lane.b32.xlu1 %v417_v13, %s738_s21  ;;  %v337_v29 = vsel %vm133_vm3, %v335_v26, %v332_v25  ;;  %v598_v31 = vld [vmem:[#allocation0 + $0x145] ss:$-156 sm:%s597_s25]   ;;  %v476_v33 = vsel %vm69_vm7, %v474_v16, %v472_v19  ;;  %s571_s26 = smov 24  ;;  %s428_s27 = smov 6 }
  0x27   :  { %v602_v32 = vld [vmem:[#allocation0 + $0x2a] sm:$0x8]   ;;  %v341_v35 = vsel %vm137_vm4, %v339_v22, %v337_v29  ;;  %v600_v36 = vsel %vm193_vm9, %v598_v31, %v595_v30  ;;  %v516_v39 = vld [vmem:[#allocation0 + $0x2e] sm:$0x80]   ;;  %v483_v48 = vld [vmem:[#allocation0 + $0x1e] sm:$0x80]  }
  0x28   :  { %v479_v34 = vld [vmem:[#allocation0 + $0x3ad] ss:$-156 sm:%s478_s23]   ;;  %384 = vrot.lane.b32.xlu0 %v383_v23, %s738_s21  ;;  %v345_v40 = vsel %vm141_vm5, %v343_v27, %v341_v35  ;;  %v604_v41 = vsel %vm65_vm6, %v602_v32, %v600_v36  ;;  %v518_v53 = vsel %vm78_vm2, %v516_v39, %v514_v38  ;;  %v426_v55 = vld [vmem:[#allocation0 + $0x9a] sm:$0x1]   ;;  %v433_v57 = vld [vmem:[#allocation0 + $0x3b] sm:$0x8]  }
  0x29   :  { %v606_v37 = vld [vmem:[#allocation0 + $0x49] sm:$0x10]   ;;  %v561_v42 = vld [vmem:[#allocation0 + $0x55] sm:$0x1]   ;;  %v349_v44 = vsel %vm78_vm2, %v347_v28, %v345_v40  ;;  %v481_v47 = vsel %vm74_vm8, %v479_v34, %v476_v33  ;;  %v429_v56 = vld [vmem:[#allocation0 + $0x156] ss:$-156 sm:%s428_s27]  }
  0x2a   :  { %v563_v43 = vld [vmem:[#allocation0 + $0x74] sm:$0x2]   ;;  %v608_v49 = vsel %vm69_vm7, %v606_v37, %v604_v41  ;;  %v610_v50 = vld [vmem:[#allocation0 + $0x68] sm:$0x20]   ;;  %v576_v59 = vld [vmem:[#allocation0 + $0x34] sm:$0x20]   ;;  %v431_v60 = vsel %vm193_vm9, %v429_v56, %v426_v55  ;;  %v485_v63 = vsel %vm78_vm2, %v483_v48, %v481_v47 }
  0x2b   :  { %v565_v45 = vsel %vm57_vm0, %v563_v43, %v561_v42  ;;  %v567_v46 = vld [vmem:[#allocation0 + $0x93] sm:$0x4]   ;;  %v614_v54 = vld [vmem:[#allocation0 + $0x87] sm:$0x40]   ;;  %v437_v61 = vld [vmem:[#allocation0 + $0x5a] sm:$0x10]   ;;  %v612_v0 = vsel %vm137_vm4, %v610_v50, %v608_v49  ;;  %v435_v1 = vsel %vm65_vm6, %v433_v57, %v431_v60 }
  0x2c   :  { %v569_v51 = vsel %vm61_vm1, %v567_v46, %v565_v45  ;;  %v572_v52 = vld [vmem:[#allocation0 + $0x289] ss:$-156 sm:%s571_s26]   ;;  %350 = vrot.lane.b32.xlu2 %v349_v44, %s738_s21  ;;  %v441_v62 = vld [vmem:[#allocation0 + $0x79] sm:$0x20]   ;;  %s739_s28 = smov 32   ;;  %v439_v5 = vsel %vm69_vm7, %v437_v61, %v435_v1  ;;  %s537_s29 = smov 24  ;;  %v616_v15 = vsel %vm141_vm5, %v614_v54, %v612_v0 }
  0x2d   :  { %v574_v58 = vsel %vm133_vm3, %v572_v52, %v569_v51  ;;  %v445_v2 = vld [vmem:[#allocation0 + $0x98] sm:$0x40]   ;;  %v527_v3 = vld [vmem:[#allocation0 + $0x45] sm:$0x1]   ;;  %s631_s30 = smov 6  ;;  %v443_v12 = vsel %vm137_vm4, %v441_v62, %v439_v5  ;;  %vm15_vm10 = vcmask 261120  }
  0x2e   :  { %v529_v4 = vld [vmem:[#allocation0 + $0x64] sm:$0x2]   ;;  %519 = vrot.lane.b32.xlu1 %v518_v53, %s739_s28  ;;  %v449_v6 = vld [vmem:[#allocation0 + $0xb7] sm:$0x80]   ;;  %v618_v9 = vld [vmem:[#allocation0 + $0xa6] sm:$0x80]   ;;  %v578_v10 = vsel %vm137_vm4, %v576_v59, %v574_v58  ;;  %v447_v16 = vsel %vm141_vm5, %v445_v2, %v443_v12 }
  0x2f   :  { %v531_v7 = vsel %vm57_vm0, %v529_v4, %v527_v3  ;;  %v533_v8 = vld [vmem:[#allocation0 + $0x83] sm:$0x4]   ;;  %v580_v11 = vld [vmem:[#allocation0 + $0x53] sm:$0x40]   ;;  %v542_v18 = vld [vmem:[#allocation0 + $0x24] sm:$0x20]   ;;  %v451_v21 = vsel %vm78_vm2, %v449_v6, %v447_v16  ;;  %v620_v26 = vsel %vm78_vm2, %v618_v9, %v616_v15 }
  0x30   :  { %v535_v13 = vsel %vm61_vm1, %v533_v8, %v531_v7  ;;  %v538_v14 = vld [vmem:[#allocation0 + $0x279] ss:$-156 sm:%s537_s29]   ;;  %486 = vrot.lane.b32.xlu0 %v485_v63, %s739_s28  ;;  %v582_v22 = vsel %vm141_vm5, %v580_v11, %v578_v10  ;;  %v40_v42 = vld [vmem:[#allocation0 + $0x80] ss:$4 sm:$0xff]   ;;  %vm82_vm11 = vcmask 1048320   ;;  %vm285_vm12 = vcmask 785920  }
  0x31   :  { %v540_v17 = vsel %vm133_vm3, %v538_v14, %v535_v13  ;;  %v629_v19 = vld [vmem:[#allocation0 + $0x99] sm:$0x1]   ;;  %v636_v25 = vld [vmem:[#allocation0 + $0x3a] sm:$0x8]   ;;  %v546_v28 = vld [vmem:[#allocation0 + $0x43] sm:$0x40]  }
  0x32   :  { %v632_v20 = vld [vmem:[#allocation0 + $0x155] ss:$-156 sm:%s631_s30]   ;;  %v544_v27 = vsel %vm137_vm4, %v542_v18, %v540_v17  ;;  %v47_v43 = vld [vmem:[#allocation0 + $0xa0] ss:$4 sm:$0xff]   ;;  %vm488_vm13 = vcmask 523520  }
  0x33   :  { %v584_v23 = vld [vmem:[#allocation0 + $0x72] sm:$0x80]   ;;  %v634_v24 = vsel %vm193_vm9, %v632_v20, %v629_v19  ;;  %v640_v31 = vld [vmem:[#allocation0 + $0x59] sm:$0x10]   ;;  %v548_v32 = vsel %vm141_vm5, %v546_v28, %v544_v27  ;;  %v550_v33 = vld [vmem:[#allocation0 + $0x62] sm:$0x80]  }
  0x34   :  { %452 = vrot.lane.b32.xlu2 %v451_v21, %s738_s21  ;;  %v586_v29 = vsel %vm78_vm2, %v584_v23, %v582_v22  ;;  %v638_v30 = vsel %vm65_vm6, %v636_v25, %v634_v24  ;;  %v644_v35 = vld [vmem:[#allocation0 + $0x78] sm:$0x20]   ;;  %v552_v36 = vsel %vm78_vm2, %v550_v33, %v548_v32  ;;  %669 = vst.msk [vmem:[%s1090_s1 + $0x4] ss:$8 sm:$0xf] %vm15_vm10, %v40_v42  }
  0x35   :  { %v642_v34 = vsel %vm69_vm7, %v640_v31, %v638_v30  ;;  %v648_v38 = vld [vmem:[#allocation0 + $0x97] sm:$0x40]   ;;  %671 = vst.msk [vmem:[%s1090_s1 + $0x5] ss:$8 sm:$0xf] %vm15_vm10, %v47_v43  }
  0x36   :  { %621 = vrot.lane.b32.xlu1 %v620_v26, %s739_s28  ;;  %v646_v37 = vsel %vm137_vm4, %v644_v35, %v642_v34  ;;  %v652_v40 = vld [vmem:[#allocation0 + $0xb6] sm:$0x80]   ;;  %670 = vst.msk [vmem:[%s1090_s1 + $0x4] ss:$8 sm:$0xf0] %vm15_vm10, %v40_v42  }
  0x37   :  { %v650_v39 = vsel %vm141_vm5, %v648_v38, %v646_v37  ;;  %672 = vst.msk [vmem:[%s1090_s1 + $0x5] ss:$8 sm:$0xf0] %vm15_vm10, %v47_v43   ;;  %v14_v44 = vld [vmem:[#allocation0] ss:$4 sm:$0xff]  }
  0x38   :  { %587 = vrot.lane.b32.xlu0 %v586_v29, %s739_s28  ;;  %v654_v41 = vsel %vm78_vm2, %v652_v40, %v650_v39  ;;  %v19_v45 = vld [vmem:[#allocation0 + $0x20] ss:$4 sm:$0xff]   ;;  %16 = vst.msk [vmem:[%s1090_s1] ss:$8 sm:$0xf] %vm15_vm10, %v14_v44  }
  0x39   :  { %663 = vst.msk [vmem:[%s1090_s1 + $0x1] ss:$8 sm:$0xf] %vm15_vm10, %v19_v45   ;;  %v26_v46 = vld [vmem:[#allocation0 + $0x40] ss:$4 sm:$0xff]  }
  0x3a   :  { %17 = vst.msk [vmem:[%s1090_s1] ss:$8 sm:$0xf0] %vm15_vm10, %v14_v44   ;;  %v33_v47 = vld [vmem:[#allocation0 + $0x60] ss:$4 sm:$0xff]  }
  0x3b   :  { %664 = vst.msk [vmem:[%s1090_s1 + $0x1] ss:$8 sm:$0xf0] %vm15_vm10, %v19_v45  }
  0x3c   :  { %553 = vrot.lane.b32.xlu2 %v552_v36, %s739_s28  ;;  %665 = vst.msk [vmem:[%s1090_s1 + $0x2] ss:$8 sm:$0xf] %vm15_vm10, %v26_v46  }
  0x3d   :  { %667 = vst.msk [vmem:[%s1090_s1 + $0x3] ss:$8 sm:$0xf] %vm15_vm10, %v33_v47  }
  0x3e   :  { %666 = vst.msk [vmem:[%s1090_s1 + $0x2] ss:$8 sm:$0xf0] %vm15_vm10, %v26_v46  }
  0x3f   :  { %668 = vst.msk [vmem:[%s1090_s1 + $0x3] ss:$8 sm:$0xf0] %vm15_vm10, %v33_v47  }
  0x44   :  { %655 = vrot.lane.b32.xlu2 %v654_v41, %s739_s28 }
  0x76   :  { %v216_v48 = vpop.permute.xlu2 %215  }
  0x77   :  { %680 = vst.msk [vmem:[%s1090_s1 + $0x14] sm:$0x3] %vm82_vm11, %v216_v48  }
  0x78   :  { %681 = vst.msk [vmem:[%s1090_s1 + $0x16] sm:$0xfc] %vm82_vm11, %v216_v48  }
  0x7e   :  { %v250_v49 = vpop.permute.xlu2 %249  }
  0x7f   :  { %682 = vst.msk [vmem:[%s1090_s1 + $0x34] sm:$0x3] %vm82_vm11, %v250_v49  }
  0x80   :  { %v148_v50 = vpop.permute.xlu1 %147   ;;  %683 = vst.msk [vmem:[%s1090_s1 + $0x36] sm:$0xfc] %vm82_vm11, %v250_v49  }
  0x81   :  { %676 = vst.msk [vmem:[%s1090_s1 + $0xa] sm:$0xf] %vm82_vm11, %v148_v50  }
  0x82   :  { %v81_v51 = vpop.permute.xlu0 %80   ;;  %677 = vst.msk [vmem:[%s1090_s1 + $0xc] sm:$0xf0] %vm82_vm11, %v148_v50  }
  0x83   :  { %673 = vst.msk [vmem:[%s1090_s1 + $0x2] sm:$0xc0] %vm82_vm11, %v81_v51  }
  0x84   :  { %83 = vst.msk [vmem:[%s1090_s1] sm:$0x3f] %vm82_vm11, %v81_v51  }
  0x86   :  { %v351_v52 = vpop.permute.xlu2 %350  }
  0x87   :  { %687 = vst.msk [vmem:[%s1090_s1 + $0xa] sm:$0xf] %vm285_vm12, %v351_v52  }
  0x88   :  { %v182_v53 = vpop.permute.xlu1 %181   ;;  %688 = vst.msk [vmem:[%s1090_s1 + $0xc] sm:$0xf0] %vm285_vm12, %v351_v52  }
  0x89   :  { %678 = vst.msk [vmem:[%s1090_s1 + $0x2a] sm:$0xf] %vm82_vm11, %v182_v53  }
  0x8a   :  { %v114_v54 = vpop.permute.xlu0 %113   ;;  %679 = vst.msk [vmem:[%s1090_s1 + $0x2c] sm:$0xf0] %vm82_vm11, %v182_v53  }
  0x8b   :  { %675 = vst.msk [vmem:[%s1090_s1 + $0x22] sm:$0xc0] %vm82_vm11, %v114_v54  }
  0x8c   :  { %674 = vst.msk [vmem:[%s1090_s1 + $0x20] sm:$0x3f] %vm82_vm11, %v114_v54  }
  0x8e   :  { %v453_v55 = vpop.permute.xlu2 %452  }
  0x8f   :  { %693 = vst.msk [vmem:[%s1090_s1 + $0x34] sm:$0x3] %vm285_vm12, %v453_v55  }
  0x90   :  { %v317_v56 = vpop.permute.xlu1 %316   ;;  %694 = vst.msk [vmem:[%s1090_s1 + $0x36] sm:$0xfc] %vm285_vm12, %v453_v55  }
  0x91   :  { %685 = vst.msk [vmem:[%s1090_s1 + $0x20] sm:$0x3f] %vm285_vm12, %v317_v56  }
  0x92   :  { %686 = vst.msk [vmem:[%s1090_s1 + $0x22] sm:$0xc0] %vm285_vm12, %v317_v56   ;;  %v284_v57 = vpop.permute.xlu0 %283  }
  0x93   :  { %286 = vst.msk [vmem:[%s1090_s1] sm:$0x3f] %vm285_vm12, %v284_v57  }
  0x94   :  { %684 = vst.msk [vmem:[%s1090_s1 + $0x2] sm:$0xc0] %vm285_vm12, %v284_v57  }
  0x96   :  { %v554_v58 = vpop.permute.xlu2 %553  }
  0x97   :  { %698 = vst.msk [vmem:[%s1090_s1 + $0xa] sm:$0xf] %vm488_vm13, %v554_v58  }
  0x98   :  { %v419_v59 = vpop.permute.xlu1 %418   ;;  %699 = vst.msk [vmem:[%s1090_s1 + $0xc] sm:$0xf0] %vm488_vm13, %v554_v58  }
  0x99   :  { %691 = vst.msk [vmem:[%s1090_s1 + $0x14] sm:$0x3] %vm285_vm12, %v419_v59  }
  0x9a   :  { %692 = vst.msk [vmem:[%s1090_s1 + $0x16] sm:$0xfc] %vm285_vm12, %v419_v59   ;;  %v385_v60 = vpop.permute.xlu0 %384  }
  0x9b   :  { %689 = vst.msk [vmem:[%s1090_s1 + $0x2a] sm:$0xf] %vm285_vm12, %v385_v60  }
  0x9c   :  { %690 = vst.msk [vmem:[%s1090_s1 + $0x2c] sm:$0xf0] %vm285_vm12, %v385_v60  }
  0x9e   :  { %v656_v61 = vpop.permute.xlu2 %655  }
  0x9f   :  { %704 = vst.msk [vmem:[%s1090_s1 + $0x34] sm:$0x3] %vm488_vm13, %v656_v61  }
  0xa0   :  { %v520_v62 = vpop.permute.xlu1 %519   ;;  %705 = vst.msk [vmem:[%s1090_s1 + $0x36] sm:$0xfc] %vm488_vm13, %v656_v61  }
  0xa1   :  { %696 = vst.msk [vmem:[%s1090_s1 + $0x20] sm:$0x3f] %vm488_vm13, %v520_v62  }
  0xa2   :  { %697 = vst.msk [vmem:[%s1090_s1 + $0x22] sm:$0xc0] %vm488_vm13, %v520_v62   ;;  %v487_v63 = vpop.permute.xlu0 %486  }
  0xa3   :  { %489 = vst.msk [vmem:[%s1090_s1] sm:$0x3f] %vm488_vm13, %v487_v63  }
  0xa4   :  { %695 = vst.msk [vmem:[%s1090_s1 + $0x2] sm:$0xc0] %vm488_vm13, %v487_v63  }
  0xa8   :  { %v622_v0 = vpop.permute.xlu1 %621  }
  0xa9   :  { %702 = vst.msk [vmem:[%s1090_s1 + $0x14] sm:$0x3] %vm488_vm13, %v622_v0  }
  0xaa   :  { %703 = vst.msk [vmem:[%s1090_s1 + $0x16] sm:$0xfc] %vm488_vm13, %v622_v0   ;;  %v588_v1 = vpop.permute.xlu0 %587  }
  0xab   :  { %700 = vst.msk [vmem:[%s1090_s1 + $0x2a] sm:$0xf] %vm488_vm13, %v588_v1  }
  0xac   :  { %701 = vst.msk [vmem:[%s1090_s1 + $0x2c] sm:$0xf0] %vm488_vm13, %v588_v1  }
  0xad   :  { %662 = vsyncpa [#allocation1], 1 }

// kernel: model_forward.1
= control target key start
LH: loop header
LB: loop body
LE: loop exit
PB: predicated region body
PF: predicated region fallthrough
CT: control target
= control target key end

     0   :  { %s1352_s9 = smov 0   ;;  %s1354_s10 = smov 0   ;;  %s2227_s0 = inlined_call_operand.vmem [shape: f32[2,32,8], index: 0, kind: input, shape index: {}]   ;;  %s2228_s1 = inlined_call_operand.vmem [shape: f32[8,1024], index: 1, kind: input, shape index: {}]   ;;  %s2229_s2 = inlined_call_operand.vmem [shape: f32[4,16,1024], index: 2, kind: output, shape index: {}]  }
   0x1   :  { %s1356_s11 = smov 0  }
   0x2 LB: > { %s1365_s12 = sadd.s32 4294967295, %s1330_s11   ;;  %s1367_s13 = sadd.s32 1, %s1330_s11   ;;  %s1330_s11 = sphi %s1356_s11, %s2279_s11   ;;  %s1326_s10 = sphi %s1354_s10, %s2278_s10   ;;  %s1322_s9 = sphi %s1352_s9, %s2277_s9  }
   0x3   : > { %s63_s14 = ssub.s32 %s1330_s11, %s1367_s13  ;;  %s66_s15 = sadd.s32 1, %s1326_s10 }
   0x4   : > { %p64_p0 = scmp.eq.s32.totalorder %s63_s14, 0  ;;  %p76_p1 = scmp.ne.s32.totalorder %s1326_s10, %s1322_s9 }
   0x5   : > { %p77_p2 = scmp.eq.s32.totalorder %s1365_s12, 1  ;;  %p1194_p3 = scmp.ge.s32.totalorder %s1330_s11, 1 }
   0x6   : > { %s1375_s16 = scalar_select %p64_p0, %s1326_s10, %s66_s15  }
   0x7   : > { %p1377_p4 = por %p77_p2, %p76_p1  ;;  %p112_p5 = scmp.lt.s32.totalorder %s1330_s11, 3 }
   0x9   : > { %p113_p6 = pnand %p1194_p3, %p112_p5 }
   0xb   : > { %116 = sbr.rel (%p113_p6) target bundleno = 510 (0x1fe), region = 28 }
  0x10   : > { %v142_v0 = vld [vmem:[%s2228_s1] sm:$0xff]  ;;  %v143_v1 = vld [vmem:[%s2228_s1 + $0x8] sm:$0xff]  ;;  %v144_v2 = vld [vmem:[%s2228_s1 + $0x10] sm:$0xff]  ;;  %p133_p7 = scmp.lt.s32.totalorder %s1365_s12, 1  ;;  %vm150_vm0 = vcmask 64512   ;;  %s1332_s15 = smov 127  }
  0x11   : > { %178 = vmatpush.msra.mxu0 %v142_v0  ;;  %207 = vmatpush.msra.mxu1 %v143_v1  ;;  %v145_v3 = vld [vmem:[%s2228_s1 + $0x18] sm:$0xff]  ;;  %v146_v5 = vld [vmem:[%s2228_s1 + $0x20] sm:$0xff]  ;;  %v147_v6 = vld [vmem:[%s2228_s1 + $0x28] sm:$0xff]  ;;  %s1333_s18 = smov 1   ;;  %s1335_s19 = smov 96  }
  0x12   : > { %v149_v4 = vld [vmem:[%s2228_s1 + $0x38] sm:$0xff]  ;;  %236 = vmatpush.msra.mxu2 %v144_v2  ;;  %265 = vmatpush.msra.mxu3 %v145_v3  ;;  %s134_s30 = scalar_select %p133_p7, %s1365_s12, 1  ;;  %v148_v7 = vld [vmem:[%s2228_s1 + $0x30] sm:$0xff] }
  0x13   : > { %294 = vmatpush.msrb.mxu0 %v146_v5  ;;  %323 = vmatpush.msrb.mxu1 %v147_v6  ;;  %s1336_s20 = smov 32   ;;  %s130_s21 = sand.u32 1, %s1322_s9  }
  0x14   : > { %381 = vmatpush.msrb.mxu3 %v149_v4  ;;  %s1277_s7 = sshll.u32 %s134_s30, 5  ;;  %352 = vmatpush.msrb.mxu2 %v148_v7  ;;  %s1195_s22 = sshll.u32 %s130_s21, 8 }
  0x15   : > { %s137_s14 = scalar_lea.vmem %s2227_s0, %s1277_s7  ;;  %s1958_s9 = scalar_lea.vmem [#allocation2], %s1195_s22 }
  0x16   : > { %v138_v8 = vld [vmem:[%s137_s14] sm:$0xff]  ;;  %v139_v9 = vld [vmem:[%s137_s14 + $0x8] sm:$0xff]  ;;  %v140_v10 = vld [vmem:[%s137_s14 + $0x10] sm:$0xff]  ;;  %s1278_s23 = sshll.u32 (%p1377_p4), %s1365_s12, 6 }
  0x17   : > { %1198 = vmatmul.msk.f32.vlgmr.msra.gmra.mxu0 %vm150_vm0, %v138_v8  ;;  %1202 = vmatmul.msk.f32.vlgmr.msra.gmra.mxu1 %vm150_vm0, %v138_v8  ;;  %v141_v11 = vld [vmem:[%s137_s14 + $0x18] sm:$0xff]  ;;  %s2153_s26 = scalar_lea.vmem (%p1377_p4), %s2229_s2, %s1278_s23 }
  0x18   : > { %1206 = vmatmul.msk.f32.vlgmr.msra.gmra.mxu2 %vm150_vm0, %v138_v8  ;;  %1210 = vmatmul.msk.f32.vlgmr.msra.gmra.mxu3 %vm150_vm0, %v138_v8 }
  0x1f   : > { %1199 = vmatmul.msk.f32.gmra.mxu0 %vm150_vm0, %v139_v9  ;;  %1203 = vmatmul.msk.f32.gmra.mxu1 %vm150_vm0, %v139_v9 }
  0x20   : > { %1207 = vmatmul.msk.f32.gmra.mxu2 %vm150_vm0, %v139_v9  ;;  %1211 = vmatmul.msk.f32.gmra.mxu3 %vm150_vm0, %v139_v9 }
  0x27   : > { %1200 = vmatmul.msk.f32.gmra.mxu0 %vm150_vm0, %v140_v10  ;;  %1204 = vmatmul.msk.f32.gmra.mxu1 %vm150_vm0, %v140_v10 }
  0x28   : > { %1208 = vmatmul.msk.f32.gmra.mxu2 %vm150_vm0, %v140_v10  ;;  %1212 = vmatmul.msk.f32.gmra.mxu3 %vm150_vm0, %v140_v10 }
  0x2f   : > { %1201 = vmatmul.msk.f32.gmra.mxu0 %vm150_vm0, %v141_v11  ;;  %1205 = vmatmul.msk.f32.gmra.mxu1 %vm150_vm0, %v141_v11 }
  0x30   : > { %1209 = vmatmul.msk.f32.gmra.mxu2 %vm150_vm0, %v141_v11  ;;  %1213 = vmatmul.msk.f32.gmra.mxu3 %vm150_vm0, %v141_v11 }
  0x37   : > { %1214 = vmatmul.msk.f32.vlgmr.msrb.gmra.mxu0 %vm150_vm0, %v138_v8  ;;  %1218 = vmatmul.msk.f32.vlgmr.msrb.gmra.mxu1 %vm150_vm0, %v138_v8 }
  0x38   : > { %1222 = vmatmul.msk.f32.vlgmr.msrb.gmra.mxu2 %vm150_vm0, %v138_v8  ;;  %1226 = vmatmul.msk.f32.vlgmr.msrb.gmra.mxu3 %vm150_vm0, %v138_v8 }
  0x3f   : > { %1215 = vmatmul.msk.f32.gmra.mxu0 %vm150_vm0, %v139_v9  ;;  %1219 = vmatmul.msk.f32.gmra.mxu1 %vm150_vm0, %v139_v9 }
  0x40   : > { %1227 = vmatmul.msk.f32.gmra.mxu3 %vm150_vm0, %v139_v9  ;;  %1223 = vmatmul.msk.f32.gmra.mxu2 %vm150_vm0, %v139_v9 }
  0x47   : > { %1216 = vmatmul.msk.f32.gmra.mxu0 %vm150_vm0, %v140_v10  ;;  %1220 = vmatmul.msk.f32.gmra.mxu1 %vm150_vm0, %v140_v10 }
  0x48   : > { %1228 = vmatmul.msk.f32.gmra.mxu3 %vm150_vm0, %v140_v10  ;;  %1224 = vmatmul.msk.f32.gmra.mxu2 %vm150_vm0, %v140_v10 }
  0x4f   : > { %1217 = vmatmul.msk.f32.gmra.mxu0 %vm150_vm0, %v141_v11  ;;  %1221 = vmatmul.msk.f32.gmra.mxu1 %vm150_vm0, %v141_v11 }
  0x50   : > { %1229 = vmatmul.msk.f32.gmra.mxu3 %vm150_vm0, %v141_v11  ;;  %1225 = vmatmul.msk.f32.gmra.mxu2 %vm150_vm0, %v141_v11 }
  0x94   : > { %v180_v12 = vpop.f32.mrf.mxu0  ;;  %v209_v13 = vpop.f32.mrf.mxu1 }
  0x95   : > { %v1442_v14 = vmax.f32 %v180_v12, 0.0  ;;  %v1444_v15 = vmax.f32 %v209_v13, 0.0  ;;  %v427_v12 = vlaneseq }
  0x97   : > { %687 = vrot.lane.b32.xlu0 %v1444_v15, %s1332_s15  ;;  %685 = vrot.lane.b32.xlu2 %v1442_v14, %s1332_s15 }
  0x9b   : > { %v238_v16 = vpop.f32.mrf.mxu2  ;;  %v267_v17 = vpop.f32.mrf.mxu3 }
  0x9c   : > { %v1450_v18 = vmax.f32 %v238_v16, 0.0  ;;  %v1452_v19 = vmax.f32 %v267_v17, 0.0  ;;  %v183_v20 = vpop.f32.mrf.mxu0  ;;  %v212_v22 = vpop.f32.mrf.mxu1  ;;  %v1572_v16 = vand.u32 127, %v427_v12 }
  0x9d   : > { %v1454_v21 = vmax.f32 %v183_v20, 0.0  ;;  %v1464_v26 = vmax.f32 %v212_v22, 0.0 }
  0x9e   : > { %689 = vrot.lane.b32.xlu1 %v1450_v18, %s1332_s15  ;;  %v2230_v17 = vand.u32 31, %v1572_v16  ;;  %v429_v20 = vadd.s32 128, %v1572_v16  ;;  %v430_v22 = vadd.s32 256, %v1572_v16  ;;  %vm701_vm2 = vcmp.lt.s32.totalorder %v1572_v16, 127 }
  0x9f   : > { %628 = vrot.lane.b32.xlu0 %v1454_v21, %s1333_s18  ;;  %691 = vrot.lane.b32.xlu2 %v1452_v19, %s1332_s15  ;;  %vm644_vm7 = vcmp.lt.s32.totalorder %v1572_v16, 1 }
  0xa0   : > { %vm556_vm1 = vcmp.ne.s32.totalorder %v2230_v17, 31 }
  0xa3   : > { %v241_v23 = vpop.f32.mrf.mxu2  ;;  %v270_v28 = vpop.f32.mrf.mxu3 }
  0xa4   : > { %v1462_v24 = vmax.f32 %v241_v23, 0.0  ;;  %v186_v25 = vpop.f32.mrf.mxu0  ;;  %v215_v27 = vpop.f32.mrf.mxu1  ;;  %v1472_v31 = vmax.f32 %v270_v28, 0.0  ;;  %v447_v28 = vand.u32 31, %v429_v20 }
  0xa5   : > { %v1470_v29 = vmax.f32 %v186_v25, 0.0  ;;  %v1482_v36 = vmax.f32 %v215_v27, 0.0  ;;  %v2231_v25 = vmov 0.0  }
  0xa6   : > { %632 = vrot.lane.b32.xlu1 %v1462_v24, %s1333_s18  ;;  %v1583_v27 = vsel %vm556_vm1, 1.0, %v2231_v25  ;;  %vm557_vm3 = vcmp.ne.s32.totalorder %v447_v28, 31  ;;  %vm533_vm5 = vcmp.ne.s32.totalorder %v447_v28, 0 }
  0xa7   : > { %630 = vrot.lane.b32.xlu0 %v1464_v26, %s1333_s18 }
  0xab   : > { %v244_v30 = vpop.f32.mrf.mxu2  ;;  %v273_v35 = vpop.f32.mrf.mxu3 }
  0xac   : > { %v1474_v32 = vmax.f32 %v244_v30, 0.0  ;;  %v189_v33 = vpop.f32.mrf.mxu0  ;;  %v218_v34 = vpop.f32.mrf.mxu1  ;;  %v1486_v39 = vmax.f32 %v273_v35, 0.0  ;;  %v454_v30 = vand.u32 31, %v430_v22  ;;  %v677_v35 = vmax.f32 %v1442_v14, %v1454_v21 }
  0xad   : > { %v1484_v37 = vmax.f32 %v218_v34, 0.0  ;;  %v1494_v44 = vmax.f32 %v189_v33, 0.0 }
  0xae   : > { %634 = vrot.lane.b32.xlu1 %v1472_v31, %s1333_s18  ;;  %786 = vrot.lane.b32.xlu2 %v1474_v32, %s1332_s15  ;;  %vm558_vm4 = vcmp.ne.s32.totalorder %v454_v30, 31  ;;  %vm534_vm6 = vcmp.ne.s32.totalorder %v454_v30, 0 }
  0xaf   : > { %782 = vrot.lane.b32.xlu0 %v1470_v29, %s1332_s15  ;;  %v1232_v12 = vsel %vm534_vm6, 1.0, %v2231_v25  ;;  %vm580_vm6 = vcmp.ge.s32.totalorder %v1572_v16, 32 }
  0xb3   : > { %v247_v38 = vpop.f32.mrf.mxu2  ;;  %v276_v41 = vpop.f32.mrf.mxu3 }
  0xb4   : > { %v296_v40 = vpop.f32.mrf.mxu0  ;;  %v325_v43 = vpop.f32.mrf.mxu1  ;;  %v1498_v46 = vmax.f32 %v247_v38, 0.0  ;;  %v1510_v51 = vmax.f32 %v276_v41, 0.0  ;;  %v1239_v41 = vsel %vm557_vm3, 1.0, %v2231_v25 }
  0xb5   : > { %v1508_v49 = vmax.f32 %v296_v40, 0.0  ;;  %v1518_v53 = vmax.f32 %v325_v43, 0.0 }
  0xb6   : > { %784 = vrot.lane.b32.xlu1 %v1482_v36, %s1332_s15  ;;  %728 = vrot.lane.b32.xlu2 %v1484_v37, %s1333_s18 }
  0xb7   : > { %788 = vrot.lane.b32.xlu0 %v1486_v39, %s1332_s15 }
  0xbb   : > { %v354_v42 = vpop.f32.mrf.mxu2  ;;  %v383_v50 = vpop.f32.mrf.mxu3 }
  0xbc   : > { %v1496_v45 = vmax.f32 %v354_v42, 0.0  ;;  %v299_v47 = vpop.f32.mrf.mxu0  ;;  %v328_v52 = vpop.f32.mrf.mxu1  ;;  %v1522_v55 = vmax.f32 %v383_v50, 0.0  ;;  %v1240_v42 = vsel %vm558_vm4, 1.0, %v2231_v25  ;;  %vm838_vm4 = vcmp.lt.s32.totalorder %v1572_v16, 32 }
  0xbd   : > { %v1506_v48 = vmax.f32 %v299_v47, 0.0  ;;  %v1520_v54 = vmax.f32 %v328_v52, 0.0 }
  0xbe   : > { %697 = vrot.lane.b32.xlu2 %v1496_v45, %s1332_s15  ;;  %726 = vrot.lane.b32.xlu1 %v1494_v44, %s1333_s18 }
  0xbf   : > { %730 = vrot.lane.b32.xlu0 %v1498_v46, %s1333_s18 }
  0xc3   : > { %v386_v56 = vpop.f32.mrf.mxu3  ;;  %v357_v59 = vpop.f32.mrf.mxu2 }
  0xc4   : > { %v302_v57 = vpop.f32.mrf.mxu0  ;;  %v331_v58 = vpop.f32.mrf.mxu1  ;;  %v1532_v61 = vmax.f32 %v386_v56, 0.0  ;;  %v1534_v62 = vmax.f32 %v357_v59, 0.0 }
  0xc5   : > { %v1530_v60 = vmax.f32 %v331_v58, 0.0  ;;  %v1542_v2 = vmax.f32 %v302_v57, 0.0  ;;  %v678_v57 = vmax.f32 %v1444_v15, %v1464_v26  ;;  %v679_v58 = vmax.f32 %v1450_v18, %v1462_v24 }
  0xc6   : > { %732 = vrot.lane.b32.xlu1 %v1510_v51, %s1333_s18  ;;  %636 = vrot.lane.b32.xlu2 %v1506_v48, %s1333_s18 }
  0xc7   : > { %693 = vrot.lane.b32.xlu0 %v1508_v49, %s1332_s15 }
  0xcb   : > { %v389_v63 = vpop.f32.mrf.mxu3  ;;  %v360_v1 = vpop.f32.mrf.mxu2 }
  0xcc   : > { %v305_v0 = vpop.f32.mrf.mxu0  ;;  %v1546_v4 = vmax.f32 %v360_v1, 0.0  ;;  %v334_v6 = vpop.f32.mrf.mxu1  ;;  %v1554_v7 = vmax.f32 %v389_v63, 0.0 }
  0xcd   : > { %v1544_v3 = vmax.f32 %v305_v0, 0.0  ;;  %v1558_v9 = vmax.f32 %v334_v6, 0.0 }
  0xce   : > { %695 = vrot.lane.b32.xlu1 %v1518_v53, %s1332_s15  ;;  %638 = vrot.lane.b32.xlu2 %v1520_v54, %s1333_s18 }
  0xcf   : > { %699 = vrot.lane.b32.xlu0 %v1522_v55, %s1332_s15 }
  0xd3   : > { %v392_v5 = vpop.f32.mrf.mxu3  ;;  %v363_v10 = vpop.f32.mrf.mxu2 }
  0xd4   : > { %v1556_v8 = vmax.f32 %v392_v5, 0.0  ;;  %v1566_v11 = vmax.f32 %v363_v10, 0.0  ;;  %v431_v5 = vadd.s32 384, %v1572_v16  ;;  %v1231_v10 = vsel %vm533_vm5, 1.0, %v2231_v25 }
  0xd6   : > { %642 = vrot.lane.b32.xlu1 %v1532_v61, %s1333_s18  ;;  %792 = vrot.lane.b32.xlu2 %v1530_v60, %s1332_s15  ;;  %v461_v20 = vand.u32 31, %v431_v5 }
  0xd7   : > { %640 = vrot.lane.b32.xlu0 %v1534_v62, %s1333_s18 }
  0xd8   : > { %vm535_vm8 = vcmp.ne.s32.totalorder %v461_v20, 0  ;;  %vm559_vm9 = vcmp.ne.s32.totalorder %v461_v20, 31 }
  0xde   : > { %790 = vrot.lane.b32.xlu1 %v1542_v2, %s1332_s15  ;;  %734 = vrot.lane.b32.xlu2 %v1544_v3, %s1333_s18 }
  0xdf   : > { %794 = vrot.lane.b32.xlu0 %v1546_v4, %s1332_s15 }
  0xe6   : > { %796 = vrot.lane.b32.xlu1 %v1554_v7, %s1332_s15  ;;  %740 = vrot.lane.b32.xlu2 %v1556_v8, %s1333_s18 }
  0xe7   : > { %736 = vrot.lane.b32.xlu0 %v1558_v9, %s1333_s18 }
  0xee   : > { %738 = vrot.lane.b32.xlu1 %v1566_v11, %s1333_s18 }
  0xf1   : > { %v1570_v13 = vpop.permute.xlu2 %685 }
  0xf9   : > { %v1579_v23 = vpop.permute.xlu2 %691 }
 0x108   : > { %v787_v43 = vpop.permute.xlu2 %786 }
 0x109   : > { %v688_v33 = vpop.permute.xlu0 %687 }
 0x10a   : > { %v708_v34 = vsel %vm701_vm2, %v1570_v13, %v688_v33 }
 0x10b   : > { %v710_v38 = vmul.f32 %v1583_v27, %v708_v34 }
 0x10d   : > { %v1591_v40 = vmax.f32 %v677_v35, %v710_v38 }
 0x10f   : > { %1002 = vrot.lane.b32.xlu0 %v1591_v40, %s1335_s19 }
 0x110   : > { %v690_v47 = vpop.permute.xlu1 %689 }
 0x111   : > { %v706_v50 = vsel %vm701_vm2, %v690_v47, %v1579_v23  ;;  %v707_v52 = vsel %vm701_vm2, %v688_v33, %v690_v47  ;;  %v1602_v56 = vpop.permute.xlu0 %628  ;;  %v729_v33 = vpop.permute.xlu2 %728 }
 0x112   : > { %v711_v59 = vmul.f32 %v1239_v41, %v707_v52  ;;  %v712_v63 = vmul.f32 %v1240_v42, %v706_v50  ;;  %v1233_v50 = vsel %vm535_vm8, 1.0, %v2231_v25 }
 0x114   : > { %v1608_v0 = vmax.f32 %v678_v57, %v711_v59  ;;  %v1610_v1 = vmax.f32 %v679_v58, %v712_v63 }
 0x116   : > { %2254 = vst [vmem:[#allocation3_spill] sm:$0xff] %v1610_v1  ;;  %1004 = vrot.lane.b32.xlu1 %v1608_v0, %s1335_s19  ;;  %1006 = vrot.lane.b32.xlu2 %v1610_v1, %s1335_s19 }
 0x118   : > { %v633_v6 = vpop.permute.xlu1 %632 }
 0x119   : > { %v631_v22 = vpop.permute.xlu0 %630 }
 0x11a   : > { %v650_v28 = vsel %vm644_vm7, %v631_v22, %v633_v6  ;;  %v651_v30 = vsel %vm644_vm7, %v1602_v56, %v631_v22 }
 0x11b   : > { %v654_v34 = vmul.f32 %v1231_v10, %v651_v30  ;;  %v655_v35 = vmul.f32 %v1232_v12, %v650_v28 }
 0x11d   : > { %v662_v38 = vmax.f32 %v654_v34, %v1444_v15  ;;  %v663_v47 = vmax.f32 %v655_v35, %v1450_v18  ;;  %v1645_v18 = vpop.permute.xlu2 %697  ;;  %v775_v34 = vmax.f32 %v1482_v36, %v1484_v37 }
 0x11f   : > { %v1629_v52 = vmax.f32 %v662_v38, %v1464_v26  ;;  %v1632_v57 = vmax.f32 %v663_v47, %v1462_v24 }
 0x120   : > { %v1634_v58 = vpop.permute.xlu1 %634 }
 0x121   : > { %v649_v59 = vsel %vm644_vm7, %v633_v6, %v1634_v58  ;;  %v1639_v63 = vpop.permute.xlu0 %782  ;;  %946 = vrot.lane.b32.xlu1 %v1629_v52, %s1335_s19  ;;  %948 = vrot.lane.b32.xlu2 %v1632_v57, %s1335_s19  ;;  %v774_v6 = vmax.f32 %v1470_v29, %v1494_v44 }
 0x122   : > { %v656_v15 = vmul.f32 %v1233_v50, %v649_v59  ;;  %v776_v59 = vmax.f32 %v1474_v32, %v1498_v46 }
 0x124   : > { %v664_v24 = vmax.f32 %v656_v15, %v1452_v19 }
 0x125   : > { %v637_v25 = vpop.permute.xlu2 %636 }
 0x126   : > { %v1649_v26 = vmax.f32 %v664_v24, %v1472_v31 }
 0x128   : > { %2255 = vst [vmem:[#allocation4_spill] sm:$0xff] %v1649_v26  ;;  %v785_v5 = vpop.permute.xlu1 %784  ;;  %950 = vrot.lane.b32.xlu0 %v1649_v26, %s1335_s19 }
 0x129   : > { %v803_v22 = vsel %vm701_vm2, %v785_v5, %v787_v43  ;;  %v804_v28 = vsel %vm701_vm2, %v1639_v63, %v785_v5  ;;  %v1660_v30 = vpop.permute.xlu0 %788 }
 0x12a   : > { %v806_v35 = vmul.f32 %v1583_v27, %v804_v28  ;;  %v807_v38 = vmul.f32 %v1239_v41, %v803_v22  ;;  %v802_v47 = vsel %vm701_vm2, %v787_v43, %v1660_v30  ;;  %v1681_v27 = vadd.s32 640, %v1572_v16 }
 0x12b   : > { %v808_v15 = vmul.f32 %v1240_v42, %v802_v47 }
 0x12c   : > { %v1670_v24 = vmax.f32 %v774_v6, %v806_v35  ;;  %v1672_v17 = vmax.f32 %v775_v34, %v807_v38  ;;  %v2233_v34 = vand.u32 31, %v1681_v27  ;;  %v2266_v1 = vand.u32 31, %v1681_v27 }
 0x12d   : > { %v1674_v5 = vmax.f32 %v776_v59, %v808_v15  ;;  %v1699_v59 = vadd.s32 896, %v1572_v16 }
 0x12e   : > { %879 = vrot.lane.b32.xlu1 %v1670_v24, %s1336_s20  ;;  %881 = vrot.lane.b32.xlu2 %v1672_v17, %s1336_s20  ;;  %vm537_vm10 = vcmp.ne.s32.totalorder %v2233_v34, 0  ;;  %vm561_vm1 = vcmp.ne.s32.totalorder %v2266_v1, 31 }
 0x12f   : > { %2256 = vst [vmem:[#allocation5_spill] sm:$0xff] %v1674_v5 }
 0x130   : > { %v1683_v41 = vpop.permute.xlu1 %726  ;;  %883 = vrot.lane.b32.xlu0 %v1674_v5, %s1336_s20  ;;  %2257 = vst [vmem:[#allocation6_spill] sm:$0xff] %v1699_v59 }
 0x131   : > { %v748_v42 = vsel %vm644_vm7, %v1683_v41, %v729_v33  ;;  %v731_v43 = vpop.permute.xlu0 %730 }
 0x132   : > { %v751_v6 = vmul.f32 %v1231_v10, %v748_v42  ;;  %v747_v22 = vsel %vm644_vm7, %v729_v33, %v731_v43  ;;  %v432_v10 = vadd.s32 512, %v1572_v16 }
 0x133   : > { %v752_v28 = vmul.f32 %v1232_v12, %v747_v22  ;;  %v639_v12 = vpop.permute.xlu2 %638  ;;  %v680_v22 = vmax.f32 %v1452_v19, %v1472_v31 }
 0x134   : > { %v759_v35 = vmax.f32 %v751_v6, %v1482_v36  ;;  %v489_v6 = vand.u32 31, %v1699_v59 }
 0x135   : > { %v760_v38 = vmax.f32 %v752_v28, %v1474_v32  ;;  %v2258_v32 = vmov 0.0  }
 0x136   : > { %v1696_v47 = vmax.f32 %v759_v35, %v1484_v37  ;;  %v1712_v36 = vsel %vm559_vm9, 1.0, %v2258_v32  ;;  %v1729_v28 = vsel %vm537_vm10, 1.0, %v2258_v32  ;;  %vm563_vm11 = vcmp.ne.s32.totalorder %v489_v6, 31 }
 0x137   : > { %v1702_v15 = vmax.f32 %v760_v38, %v1498_v46  ;;  %v468_v38 = vand.u32 31, %v432_v10  ;;  %v1748_v31 = vsel %vm563_vm11, 1.0, %v2258_v32  ;;  %vm539_vm0 = vcmp.ne.s32.totalorder %v489_v6, 0 }
 0x138   : > { %v1707_v33 = vpop.permute.xlu1 %732  ;;  %824 = vrot.lane.b32.xlu0 %v1696_v47, %s1336_s20  ;;  %v1243_v1 = vsel %vm561_vm1, 1.0, %v2258_v32 }
 0x139   : > { %v746_v37 = vsel %vm644_vm7, %v731_v43, %v1707_v33  ;;  %v1717_v46 = vpop.permute.xlu0 %693  ;;  %826 = vrot.lane.b32.xlu1 %v1702_v15, %s1336_s20  ;;  %v647_v43 = vsel %vm644_vm7, %v637_v25, %v639_v12  ;;  %vm536_vm12 = vcmp.ne.s32.totalorder %v468_v38, 0  ;;  %vm560_vm15 = vcmp.ne.s32.totalorder %v468_v38, 31 }
 0x13a   : > { %v753_v20 = vmul.f32 %v1233_v50, %v746_v37  ;;  %v705_v42 = vsel %vm701_vm2, %v1579_v23, %v1717_v46  ;;  %v658_v23 = vmul.f32 %v1729_v28, %v647_v43  ;;  %v648_v43 = vsel %vm644_vm7, %v1634_v58, %v637_v25 }
 0x13b   : > { %v713_v35 = vmul.f32 %v1712_v36, %v705_v42  ;;  %v434_v42 = vadd.s32 768, %v1572_v16 }
 0x13c   : > { %v761_v50 = vmax.f32 %v753_v20, %v1486_v39  ;;  %v666_v20 = vmax.f32 %v658_v23, %v1518_v53  ;;  %v2261_v23 = vand.u32 31, %v1572_v16 }
 0x13d   : > { %v1735_v37 = vmax.f32 %v680_v22, %v713_v35  ;;  %v1755_v22 = vsel %vm536_vm12, 1.0, %v2258_v32 }
 0x13e   : > { %v1739_v34 = vmax.f32 %v761_v50, %v1510_v51  ;;  %v684_v50 = vmax.f32 %v1522_v55, %v1532_v61  ;;  %vm532_vm13 = vcmp.ne.s32.totalorder %v2261_v23, 0  ;;  %v657_v59 = vmul.f32 %v1755_v22, %v648_v43 }
 0x13f   : > { %2259 = vst [vmem:[#allocation7_spill] sm:$0xff] %v1735_v37  ;;  %v1773_v25 = vmax.f32 %v666_v20, %v1520_v54  ;;  %v793_v20 = vpop.permute.xlu2 %792 }
 0x140   : > { %2260 = vst [vmem:[#allocation8_spill] sm:$0xff] %v1739_v34  ;;  %v1741_v19 = vpop.permute.xlu1 %695  ;;  %1008 = vrot.lane.b32.xlu0 %v1735_v37, %s1335_s19  ;;  %828 = vrot.lane.b32.xlu2 %v1739_v34, %s1336_s20  ;;  %v482_v34 = vand.u32 31, %v434_v42  ;;  %v665_v43 = vmax.f32 %v657_v59, %v1508_v49 }
 0x141   : > { %v1750_v10 = vpop.permute.xlu0 %699  ;;  %2263 = vst [vmem:[#allocation10_spill] sm:$0xff] %v1773_v25 }
 0x142   : > { %v709_v35 = vsel %vm701_vm2, %v1750_v10, %v1570_v13  ;;  %vm538_vm14 = vcmp.ne.s32.totalorder %v482_v34, 0  ;;  %v1780_v13 = vsel %vm532_vm13, 1.0, %v2258_v32  ;;  %v1798_v59 = vmax.f32 %v665_v43, %v1506_v48 }
 0x143   : > { %v717_v37 = vmul.f32 %v1748_v31, %v709_v35  ;;  %v778_v43 = vmax.f32 %v1542_v2, %v1544_v3  ;;  %vm562_vm3 = vcmp.ne.s32.totalorder %v482_v34, 31 }
 0x144   : > { %2265 = vst [vmem:[#allocation12_spill] sm:$0xff] %v1798_v59  ;;  %v1244_v27 = vsel %vm562_vm3, 1.0, %v2258_v32 }
 0x145   : > { %v1770_v26 = vmax.f32 %v684_v50, %v717_v37  ;;  %v1788_v50 = vsel %vm538_vm14, 1.0, %v2258_v32 }
 0x147   : > { %2262 = vst [vmem:[#allocation9_spill] sm:$0xff] %v1770_v26  ;;  %1016 = vrot.lane.b32.xlu1 %v1770_v26, %s1335_s19 }
 0x148   : > { %v643_v58 = vpop.permute.xlu1 %642  ;;  %954 = vrot.lane.b32.xlu2 %v1773_v25, %s1335_s19 }
 0x149   : > { %v652_v42 = vsel %vm644_vm7, %v643_v58, %v1602_v56  ;;  %v641_v37 = vpop.permute.xlu0 %640 }
 0x14a   : > { %v653_v35 = vmul.f32 %v1780_v13, %v652_v42  ;;  %v646_v23 = vsel %vm644_vm7, %v639_v12, %v641_v37  ;;  %v1801_v42 = vsel %vm560_vm15, 1.0, %v2258_v32  ;;  %v1237_v12 = vsel %vm539_vm0, 1.0, %v2258_v32 }
 0x14b   : > { %v659_v26 = vmul.f32 %v1788_v50, %v646_v23  ;;  %v645_v6 = vsel %vm644_vm7, %v641_v37, %v643_v58  ;;  %v777_v58 = vmax.f32 %v1486_v39, %v1510_v51  ;;  %v735_v37 = vpop.permute.xlu2 %734 }
 0x14c   : > { %v661_v25 = vmax.f32 %v653_v35, %v1442_v14 }
 0x14d   : > { %v667_v35 = vmax.f32 %v659_v26, %v1496_v45 }
 0x14e   : > { %v1795_v56 = vmax.f32 %v661_v25, %v1454_v21 }
 0x14f   : > { %952 = vrot.lane.b32.xlu1 %v1798_v59, %s1335_s19  ;;  %v1829_v26 = vmax.f32 %v667_v35, %v1534_v62 }
 0x150   : > { %2264 = vst [vmem:[#allocation11_spill] sm:$0xff] %v1795_v56  ;;  %944 = vrot.lane.b32.xlu0 %v1795_v56, %s1335_s19  ;;  %v791_v14 = vpop.permute.xlu1 %790  ;;  %v660_v56 = vmul.f32 %v1237_v12, %v645_v6 }
 0x151   : > { %v800_v21 = vsel %vm701_vm2, %v791_v14, %v793_v20  ;;  %v801_v38 = vsel %vm701_vm2, %v1660_v30, %v791_v14  ;;  %v795_v25 = vpop.permute.xlu0 %794 }
 0x152   : > { %v809_v23 = vmul.f32 %v1712_v36, %v801_v38  ;;  %v810_v59 = vmul.f32 %v1801_v42, %v800_v21  ;;  %v799_v36 = vsel %vm701_vm2, %v793_v20, %v795_v25  ;;  %v668_v39 = vmax.f32 %v660_v56, %v1522_v55 }
 0x153   : > { %v811_v14 = vmul.f32 %v1243_v1, %v799_v36  ;;  %v745_v55 = vsel %vm644_vm7, %v1707_v33, %v735_v37  ;;  %v779_v56 = vmax.f32 %v1530_v60, %v1558_v9  ;;  %v780_v21 = vmax.f32 %v1546_v4, %v1566_v11  ;;  %v741_v35 = vpop.permute.xlu2 %740 }
 0x154   : > { %v1822_v5 = vmax.f32 %v778_v43, %v810_v59  ;;  %v1831_v30 = vmax.f32 %v777_v58, %v809_v23  ;;  %v1854_v38 = vmax.f32 %v668_v39, %v1532_v61  ;;  %v754_v43 = vmul.f32 %v1755_v22, %v745_v55 }
 0x155   : > { %v1863_v23 = vmax.f32 %v779_v56, %v811_v14  ;;  %v937_v56 = vmax.f32 %v1629_v52, %v1696_v47 }
 0x156   : > { %887 = vrot.lane.b32.xlu2 %v1822_v5, %s1336_s20  ;;  %v762_v22 = vmax.f32 %v754_v43, %v1542_v2 }
 0x157   : > { %885 = vrot.lane.b32.xlu1 %v1831_v30, %s1336_s20 }
 0x158   : > { %956 = vrot.lane.b32.xlu0 %v1829_v26, %s1335_s19  ;;  %v797_v51 = vpop.permute.xlu1 %796 }
 0x159   : > { %v798_v34 = vsel %vm701_vm2, %v795_v25, %v797_v51  ;;  %v737_v59 = vpop.permute.xlu0 %736  ;;  %v805_v25 = vsel %vm701_vm2, %v797_v51, %v1639_v63  ;;  %v749_v63 = vsel %vm644_vm7, %v741_v35, %v1683_v41  ;;  %v1887_v41 = vmax.f32 %v762_v22, %v1544_v3 }
 0x15a   : > { %v812_v6 = vmul.f32 %v1244_v27, %v798_v34  ;;  %v744_v20 = vsel %vm644_vm7, %v735_v37, %v737_v59  ;;  %v813_v37 = vmul.f32 %v1748_v31, %v805_v25  ;;  %v750_v39 = vmul.f32 %v1780_v13, %v749_v63 }
 0x15b   : > { %v755_v33 = vmul.f32 %v1729_v28, %v744_v20  ;;  %v781_v28 = vmax.f32 %v1554_v7, %v1556_v8 }
 0x15c   : > { %v1865_v58 = vmax.f32 %v780_v21, %v812_v6  ;;  %v758_v2 = vmax.f32 %v750_v39, %v1470_v29 }
 0x15d   : > { %v763_v36 = vmax.f32 %v755_v33, %v1530_v60  ;;  %v1882_v51 = vmax.f32 %v781_v28, %v813_v37  ;;  %v704_v60 = vsel %vm701_vm2, %v1717_v46, %v1741_v19  ;;  %v938_v33 = vmax.f32 %v1632_v57, %v1702_v15 }
 0x15e   : > { %958 = vrot.lane.b32.xlu2 %v1854_v38, %s1335_s19  ;;  %v714_v13 = vmul.f32 %v1801_v42, %v704_v60  ;;  %v1909_v29 = vmax.f32 %v758_v2, %v1494_v44  ;;  %v995_v42 = vmax.f32 %v1608_v0, %v1672_v17  ;;  %v2267_v2 = vld [vmem:[#allocation3_spill] sm:$0xff] }
 0x15f   : > { %891 = vrot.lane.b32.xlu1 %v1865_v58, %s1336_s20  ;;  %v1890_v14 = vmax.f32 %v763_v36, %v1558_v9 }
 0x160   : > { %889 = vrot.lane.b32.xlu0 %v1863_v23, %s1336_s20  ;;  %v739_v61 = vpop.permute.xlu1 %738 }
 0x161   : > { %v742_v31 = vsel %vm644_vm7, %v739_v61, %v741_v35  ;;  %v743_v3 = vsel %vm644_vm7, %v737_v59, %v739_v61 }
 0x162   : > { %v757_v34 = vmul.f32 %v1237_v12, %v742_v31  ;;  %v681_v12 = vmax.f32 %v1508_v49, %v1506_v48  ;;  %v756_v46 = vmul.f32 %v1788_v50, %v743_v3  ;;  %v683_v49 = vmax.f32 %v1496_v45, %v1534_v62 }
 0x163   : > { %v682_v45 = vmax.f32 %v1518_v53, %v1520_v54 }
 0x164   : > { %v765_v9 = vmax.f32 %v757_v34, %v1554_v7  ;;  %v1913_v6 = vmax.f32 %v681_v12, %v714_v13  ;;  %v702_v7 = vsel %vm701_vm2, %v1645_v18, %v1750_v10  ;;  %v764_v48 = vmax.f32 %v756_v46, %v1546_v4  ;;  %v2268_v13 = vld [vmem:[#allocation5_spill] sm:$0xff] }
 0x165   : > { %v716_v44 = vmul.f32 %v1244_v27, %v702_v7  ;;  %v703_v10 = vsel %vm701_vm2, %v1741_v19, %v1645_v18  ;;  %vm960_vm2 = vcmp.lt.s32.totalorder %v1572_v16, 96  ;;  %v994_v19 = vmax.f32 %v1591_v40, %v1670_v24 }
 0x166   : > { %893 = vrot.lane.b32.xlu2 %v1882_v51, %s1336_s20  ;;  %v1916_v55 = vmax.f32 %v765_v9, %v1556_v8  ;;  %v1930_v8 = vmax.f32 %v764_v48, %v1566_v11  ;;  %v715_v50 = vmul.f32 %v1243_v1, %v703_v10 }
 0x167   : > { %832 = vrot.lane.b32.xlu1 %v1890_v14, %s1336_s20  ;;  %v1938_v4 = vmax.f32 %v683_v49, %v716_v44  ;;  %v2269_v44 = vld [vmem:[#allocation4_spill] sm:$0xff] }
 0x168   : > { %830 = vrot.lane.b32.xlu0 %v1887_v41, %s1336_s20  ;;  %v1944_v62 = vmax.f32 %v682_v45, %v715_v50  ;;  %v2270_v50 = vld [vmem:[#allocation8_spill] sm:$0xff] }
 0x16e   : > { %822 = vrot.lane.b32.xlu2 %v1909_v29, %s1336_s20 }
 0x16f   : > { %1010 = vrot.lane.b32.xlu1 %v1913_v6, %s1335_s19 }
 0x170   : > { %836 = vrot.lane.b32.xlu0 %v1916_v55, %s1336_s20  ;;  %v1007_v11 = vpop.permute.xlu2 %1006 }
 0x176   : > { %834 = vrot.lane.b32.xlu2 %v1930_v8, %s1336_s20 }
 0x178   : > { %1014 = vrot.lane.b32.xlu0 %v1938_v4, %s1335_s19 }
 0x17b   : > { %v949_v20 = vpop.permute.xlu2 %948 }
 0x17e   : > { %1012 = vrot.lane.b32.xlu2 %v1944_v62, %s1335_s19 }
 0x181   : > { %v1003_v18 = vpop.permute.xlu0 %1002 }
 0x188   : > { %v1005_v1 = vpop.permute.xlu1 %1004  ;;  %v882_v35 = vpop.permute.xlu2 %881 }
 0x189   : > { %v1023_v53 = vsel %vm960_vm2, %v1005_v1, %v1007_v11  ;;  %v1024_v54 = vsel %vm960_vm2, %v1003_v18, %v1005_v1 }
 0x18a   : > { %v1034_v27 = vmax.f32 %v994_v19, %v1024_v54  ;;  %v1035_v59 = vmax.f32 %v995_v42, %v1023_v53  ;;  %v996_v42 = vmax.f32 %v2267_v2, %v2268_v13  ;;  %v2271_v54 = vld [vmem:[#allocation6_spill] sm:$0xff] }
 0x18b   : > { %vm611_vm5 = vcmp.lt.s32.totalorder %v2271_v54, 992 }
 0x18c   : > { %1264 = vst [vmem:[%s1958_s9 + $0xc0] sm:$0xff] %v1034_v27  ;;  %v1247_v27 = vsel %vm611_vm5, 1.0, %v2258_v32 }
 0x18d   : > { %1265 = vst [vmem:[%s1958_s9 + $0xc8] sm:$0xff] %v1035_v59 }
 0x193   : > { %v947_v21 = vpop.permute.xlu1 %946 }
 0x194   : > { %v966_v25 = vsel %vm960_vm2, %v947_v21, %v949_v20 }
 0x195   : > { %v978_v43 = vmax.f32 %v937_v56, %v966_v25  ;;  %v2272_v56 = vld [vmem:[#allocation9_spill] sm:$0xff] }
 0x196   : > { %v1001_v25 = vmax.f32 %v2272_v56, %v1882_v51 }
 0x197   : > { %1257 = vst [vmem:[%s1958_s9 + $0x88] sm:$0xff] %v978_v43 }
 0x19a   : > { %v951_v37 = vpop.permute.xlu0 %950  ;;  %v1972_v28 = vpop.permute.xlu2 %828 }
 0x19b   : > { %v965_v61 = vsel %vm960_vm2, %v949_v20, %v951_v37 }
 0x19c   : > { %v979_v63 = vmax.f32 %v938_v33, %v965_v61 }
 0x19e   : > { %1258 = vst [vmem:[%s1958_s9 + $0x90] sm:$0xff] %v979_v63  ;;  %v939_v63 = vmax.f32 %v2269_v44, %v2270_v50 }
 0x1a0   : > { %v880_v22 = vpop.permute.xlu1 %879 }
 0x1a1   : > { %v901_v36 = vsel %vm838_vm4, %v880_v22, %v882_v35 }
 0x1a2   : > { %v912_v31 = vmax.f32 %v901_v36, %v1608_v0  ;;  %v1978_v39 = vpop.permute.xlu0 %883  ;;  %v955_v12 = vpop.permute.xlu2 %954 }
 0x1a3   : > { %v900_v34 = vsel %vm838_vm4, %v882_v35, %v1978_v39  ;;  %v2020_v35 = vsel %vm580_vm6, 1.0, %v2258_v32  ;;  %v943_v32 = vmax.f32 %v1854_v38, %v1916_v55 }
 0x1a4   : > { %v920_v60 = vmax.f32 %v912_v31, %v1672_v17  ;;  %v913_v3 = vmax.f32 %v900_v34, %v2267_v2  ;;  %v2273_v31 = vld [vmem:[#allocation11_spill] sm:$0xff]  ;;  %v2274_v2 = vld [vmem:[#allocation12_spill] sm:$0xff] }
 0x1a5   : > { %v936_v34 = vmax.f32 %v2273_v31, %v1909_v29 }
 0x1a6   : > { %1249 = vst [vmem:[%s1958_s9 + $0x48] sm:$0xff] %v920_v60  ;;  %v921_v9 = vmax.f32 %v913_v3, %v2268_v13  ;;  %v940_v3 = vmax.f32 %v2274_v2, %v1887_v41 }
 0x1a8   : > { %1250 = vst [vmem:[%s1958_s9 + $0x50] sm:$0xff] %v921_v9 }
 0x1aa   : > { %v825_v46 = vpop.permute.xlu0 %824 }
 0x1ab   : > { %v827_v0 = vpop.permute.xlu1 %826 }
 0x1ac   : > { %v843_v7 = vsel %vm838_vm4, %v827_v0, %v1972_v28  ;;  %v844_v48 = vsel %vm838_vm4, %v825_v46, %v827_v0 }
 0x1ad   : > { %v857_v17 = vmax.f32 %v844_v48, %v1632_v57  ;;  %v858_v49 = vmax.f32 %v843_v7, %v2269_v44 }
 0x1af   : > { %v865_v10 = vmax.f32 %v857_v17, %v1702_v15  ;;  %v866_v45 = vmax.f32 %v858_v49, %v2270_v50 }
 0x1b0   : > { %v1997_v19 = vpop.permute.xlu2 %887 }
 0x1b1   : > { %873 = vst [vmem:[%s1958_s9 + $0x10] sm:$0xff] %v865_v10 }
 0x1b2   : > { %874 = vst [vmem:[%s1958_s9 + $0x18] sm:$0xff] %v866_v45  ;;  %v2003_v1 = vpop.permute.xlu0 %1008 }
 0x1b3   : > { %v1022_v57 = vsel %vm960_vm2, %v1007_v11, %v2003_v1 }
 0x1b4   : > { %v1036_v53 = vmax.f32 %v996_v42, %v1022_v57  ;;  %v942_v57 = vmax.f32 %v1829_v26, %v1930_v8 }
 0x1b6   : > { %1266 = vst [vmem:[%s1958_s9 + $0xd0] sm:$0xff] %v1036_v53 }
 0x1b8   : > { %v959_v15 = vpop.permute.xlu2 %958 }
 0x1b9   : > { %v2011_v59 = vpop.permute.xlu1 %1016 }
 0x1ba   : > { %v1025_v20 = vsel %vm960_vm2, %v2011_v59, %v1003_v18 }
 0x1bb   : > { %v1033_v43 = vmul.f32 %v1247_v27, %v1025_v20 }
 0x1bd   : > { %v1041_v11 = vmax.f32 %v1001_v25, %v1033_v43 }
 0x1bf   : > { %1271 = vst [vmem:[%s1958_s9 + $0xf8] sm:$0xff] %v1041_v11  ;;  %v2276_v11 = vld [vmem:[#allocation7_spill] sm:$0xff] }
 0x1c0   : > { %v894_v33 = vpop.permute.xlu2 %893 }
 0x1c1   : > { %v902_v61 = vsel %vm838_vm4, %v894_v33, %v880_v22  ;;  %v953_v60 = vpop.permute.xlu1 %952 }
 0x1c2   : > { %v903_v18 = vmul.f32 %v2020_v35, %v902_v61  ;;  %v945_v36 = vpop.permute.xlu0 %944  ;;  %v963_v9 = vsel %vm960_vm2, %v953_v60, %v955_v12  ;;  %v964_v0 = vsel %vm960_vm2, %v951_v37, %v953_v60 }
 0x1c3   : > { %v967_v22 = vsel %vm960_vm2, %v945_v36, %v947_v21  ;;  %v968_v13 = vsel %vm960_vm2, %v959_v15, %v945_v36  ;;  %v980_v44 = vmax.f32 %v939_v63, %v964_v0  ;;  %v981_v21 = vmax.f32 %v940_v3, %v963_v9 }
 0x1c4   : > { %v911_v7 = vmax.f32 %v903_v18, %v1591_v40  ;;  %v976_v48 = vmul.f32 %v1247_v27, %v968_v13  ;;  %v977_v17 = vmax.f32 %v936_v34, %v967_v22 }
 0x1c5   : > { %1259 = vst [vmem:[%s1958_s9 + $0x98] sm:$0xff] %v980_v44 }
 0x1c6   : > { %v919_v49 = vmax.f32 %v911_v7, %v1670_v24  ;;  %v984_v10 = vmax.f32 %v943_v32, %v976_v48  ;;  %1256 = vst [vmem:[%s1958_s9 + $0x80] sm:$0xff] %v977_v17  ;;  %v2275_v24 = vld [vmem:[#allocation10_spill] sm:$0xff] }
 0x1c7   : > { %1260 = vst [vmem:[%s1958_s9 + $0xa0] sm:$0xff] %v981_v21  ;;  %v941_v42 = vmax.f32 %v2275_v24, %v1890_v14 }
 0x1c8   : > { %1248 = vst [vmem:[%s1958_s9 + $0x40] sm:$0xff] %v919_v49  ;;  %v2047_v50 = vpop.permute.xlu2 %822 }
 0x1c9   : > { %1263 = vst [vmem:[%s1958_s9 + $0xb8] sm:$0xff] %v984_v10  ;;  %v845_v45 = vsel %vm838_vm4, %v2047_v50, %v825_v46  ;;  %v886_v53 = vpop.permute.xlu1 %885 }
 0x1ca   : > { %v856_v40 = vmax.f32 %v845_v45, %v1629_v52  ;;  %v957_v37 = vpop.permute.xlu0 %956  ;;  %v898_v52 = vsel %vm838_vm4, %v886_v53, %v1997_v19  ;;  %v899_v27 = vsel %vm838_vm4, %v1978_v39, %v886_v53  ;;  %v997_v45 = vmax.f32 %v2276_v11, %v1831_v30 }
 0x1cb   : > { %v961_v54 = vsel %vm960_vm2, %v957_v37, %v959_v15  ;;  %v962_v46 = vsel %vm960_vm2, %v955_v12, %v957_v37  ;;  %v914_v61 = vmax.f32 %v899_v27, %v2276_v11  ;;  %v915_v63 = vmax.f32 %v898_v52, %v1913_v6  ;;  %v1091_v27 = vld [vmem:[%s1958_s9 + $0x48] sm:$0xff] (%p1377_p4) }
 0x1cc   : > { %v864_v20 = vmax.f32 %v856_v40, %v1696_v47  ;;  %v982_v25 = vmax.f32 %v941_v42, %v962_v46  ;;  %v983_v43 = vmax.f32 %v942_v57, %v961_v54  ;;  %1092 = vst [vmem:[%s2153_s26 + $0x88] sm:$0xff] (%p1377_p4), %v1091_v27 }
 0x1cd   : > { %v922_v15 = vmax.f32 %v914_v61, %v1831_v30  ;;  %v923_v12 = vmax.f32 %v915_v63, %v1822_v5 }
 0x1ce   : > { %872 = vst [vmem:[%s1958_s9 + $0x8] sm:$0xff] %v864_v20  ;;  %v1093_v20 = vld [vmem:[%s1958_s9 + $0x50] sm:$0xff] (%p1377_p4) }
 0x1cf   : > { %1261 = vst [vmem:[%s1958_s9 + $0xa8] sm:$0xff] %v982_v25  ;;  %v1089_v52 = vld [vmem:[%s1958_s9 + $0x40] sm:$0xff] (%p1377_p4) }
 0x1d0   : > { %1262 = vst [vmem:[%s1958_s9 + $0xb0] sm:$0xff] %v983_v43 }
 0x1d1   : > { %1251 = vst [vmem:[%s1958_s9 + $0x58] sm:$0xff] %v922_v15  ;;  %v892_v47 = vpop.permute.xlu1 %891  ;;  %v1105_v15 = vld [vmem:[%s1958_s9 + $0x80] sm:$0xff] (%p1377_p4) }
 0x1d2   : > { %1252 = vst [vmem:[%s1958_s9 + $0x60] sm:$0xff] %v923_v12  ;;  %v890_v39 = vpop.permute.xlu0 %889  ;;  %v895_v36 = vsel %vm838_vm4, %v892_v47, %v894_v33  ;;  %v1107_v12 = vld [vmem:[%s1958_s9 + $0x88] sm:$0xff] (%p1377_p4) }
 0x1d3   : > { %v897_v18 = vsel %vm838_vm4, %v1997_v19, %v890_v39  ;;  %v896_v34 = vsel %vm838_vm4, %v890_v39, %v892_v47  ;;  %v918_v3 = vmax.f32 %v895_v36, %v2272_v56  ;;  %v835_v19 = vpop.permute.xlu2 %834  ;;  %1090 = vst [vmem:[%s2153_s26 + $0x80] sm:$0xff] (%p1377_p4), %v1089_v52  ;;  %v1109_v39 = vld [vmem:[%s1958_s9 + $0x90] sm:$0xff] (%p1377_p4)  ;;  %v1111_v47 = vld [vmem:[%s1958_s9 + $0x98] sm:$0xff] (%p1377_p4) }
 0x1d4   : > { %v916_v32 = vmax.f32 %v897_v18, %v1944_v62  ;;  %v917_v60 = vmax.f32 %v896_v34, %v1938_v4  ;;  %1094 = vst [vmem:[%s2153_s26 + $0x90] sm:$0xff] (%p1377_p4), %v1093_v20  ;;  %v1113_v18 = vld [vmem:[%s1958_s9 + $0xa0] sm:$0xff] (%p1377_p4) }
 0x1d5   : > { %v926_v9 = vmax.f32 %v918_v3, %v1882_v51  ;;  %1106 = vst [vmem:[%s2153_s26 + $0x100] sm:$0xff] (%p1377_p4), %v1105_v15  ;;  %v1123_v3 = vld [vmem:[%s1958_s9 + $0xc8] sm:$0xff] (%p1377_p4) }
 0x1d6   : > { %v924_v22 = vmax.f32 %v916_v32, %v1863_v23  ;;  %v925_v13 = vmax.f32 %v917_v60, %v1865_v58  ;;  %1108 = vst [vmem:[%s2153_s26 + $0x108] sm:$0xff] (%p1377_p4), %v1107_v12  ;;  %v1115_v36 = vld [vmem:[%s1958_s9 + $0xa8] sm:$0xff] (%p1377_p4)  ;;  %v1119_v32 = vld [vmem:[%s1958_s9 + $0xb8] sm:$0xff] (%p1377_p4)  ;;  %v1121_v60 = vld [vmem:[%s1958_s9 + $0xc0] sm:$0xff] (%p1377_p4) }
 0x1d7   : > { %1255 = vst [vmem:[%s1958_s9 + $0x78] sm:$0xff] %v926_v9  ;;  %v1117_v34 = vld [vmem:[%s1958_s9 + $0xb0] sm:$0xff] (%p1377_p4) }
 0x1d8   : > { %1253 = vst [vmem:[%s1958_s9 + $0x68] sm:$0xff] %v924_v22  ;;  %v1095_v25 = vld [vmem:[%s1958_s9 + $0x58] sm:$0xff] (%p1377_p4)  ;;  %v1125_v22 = vld [vmem:[%s1958_s9 + $0xd0] sm:$0xff] (%p1377_p4) }
 0x1d9   : > { %1254 = vst [vmem:[%s1958_s9 + $0x70] sm:$0xff] %v925_v13  ;;  %v833_v0 = vpop.permute.xlu1 %832  ;;  %v1097_v43 = vld [vmem:[%s1958_s9 + $0x60] sm:$0xff] (%p1377_p4) }
 0x1da   : > { %v831_v33 = vpop.permute.xlu0 %830  ;;  %v840_v56 = vsel %vm838_vm4, %v833_v0, %v835_v19  ;;  %1096 = vst [vmem:[%s2153_s26 + $0x98] sm:$0xff] (%p1377_p4), %v1095_v25 }
 0x1db   : > { %v842_v7 = vsel %vm838_vm4, %v1972_v28, %v831_v33  ;;  %v841_v48 = vsel %vm838_vm4, %v831_v33, %v833_v0  ;;  %v861_v44 = vmax.f32 %v840_v56, %v1829_v26  ;;  %v1013_v28 = vpop.permute.xlu2 %1012  ;;  %v998_v26 = vmax.f32 %v1913_v6, %v1822_v5  ;;  %1098 = vst [vmem:[%s2153_s26 + $0xa0] sm:$0xff] (%p1377_p4), %v1097_v43  ;;  %v1135_v0 = vld [vmem:[%s1958_s9 + $0xf8] sm:$0xff] (%p1377_p4) }
 0x1dc   : > { %v859_v51 = vmax.f32 %v842_v7, %v2274_v2  ;;  %v860_v17 = vmax.f32 %v841_v48, %v2275_v24  ;;  %1110 = vst [vmem:[%s2153_s26 + $0x110] sm:$0xff] (%p1377_p4), %v1109_v39 }
 0x1dd   : > { %v869_v21 = vmax.f32 %v861_v44, %v1930_v8  ;;  %1112 = vst [vmem:[%s2153_s26 + $0x118] sm:$0xff] (%p1377_p4), %v1111_v47 }
 0x1de   : > { %v867_v49 = vmax.f32 %v859_v51, %v1887_v41  ;;  %v868_v10 = vmax.f32 %v860_v17, %v1890_v14  ;;  %v1103_v63 = vld [vmem:[%s1958_s9 + $0x78] sm:$0xff] (%p1377_p4)  ;;  %1114 = vst [vmem:[%s2153_s26 + $0x120] sm:$0xff] (%p1377_p4), %v1113_v18 }
 0x1df   : > { %877 = vst [vmem:[%s1958_s9 + $0x30] sm:$0xff] %v869_v21  ;;  %v1099_v11 = vld [vmem:[%s1958_s9 + $0x68] sm:$0xff] (%p1377_p4) }
 0x1e0   : > { %875 = vst [vmem:[%s1958_s9 + $0x20] sm:$0xff] %v867_v49  ;;  %v1101_v61 = vld [vmem:[%s1958_s9 + $0x70] sm:$0xff] (%p1377_p4) }
 0x1e1   : > { %876 = vst [vmem:[%s1958_s9 + $0x28] sm:$0xff] %v868_v10  ;;  %v1011_v2 = vpop.permute.xlu1 %1010 }
 0x1e2   : > { %v837_v41 = vpop.permute.xlu0 %836  ;;  %v1020_v14 = vsel %vm960_vm2, %v1011_v2, %v1013_v28  ;;  %v1021_v8 = vsel %vm960_vm2, %v2003_v1, %v1011_v2  ;;  %1100 = vst [vmem:[%s2153_s26 + $0xa8] sm:$0xff] (%p1377_p4), %v1099_v11 }
 0x1e3   : > { %v839_v40 = vsel %vm838_vm4, %v835_v19, %v837_v41  ;;  %v846_v30 = vsel %vm838_vm4, %v837_v41, %v2047_v50  ;;  %v1037_v37 = vmax.f32 %v997_v45, %v1021_v8  ;;  %v1038_v24 = vmax.f32 %v998_v26, %v1020_v14  ;;  %1102 = vst [vmem:[%s2153_s26 + $0xb0] sm:$0xff] (%p1377_p4), %v1101_v61 }
 0x1e4   : > { %v847_v5 = vmul.f32 %v2020_v35, %v846_v30  ;;  %v862_v6 = vmax.f32 %v839_v40, %v1854_v38  ;;  %v999_v50 = vmax.f32 %v1944_v62, %v1863_v23  ;;  %v1000_v35 = vmax.f32 %v1938_v4, %v1865_v58  ;;  %v1075_v23 = vld [vmem:[%s1958_s9 + $0x8] sm:$0xff] (%p1377_p4)  ;;  %v1077_v58 = vld [vmem:[%s1958_s9 + $0x10] sm:$0xff] (%p1377_p4)  ;;  %1104 = vst [vmem:[%s2153_s26 + $0xb8] sm:$0xff] (%p1377_p4), %v1103_v63 }
 0x1e5   : > { %1267 = vst [vmem:[%s1958_s9 + $0xd8] sm:$0xff] %v1037_v37 }
 0x1e6   : > { %v855_v42 = vmax.f32 %v847_v5, %v2273_v31  ;;  %v870_v1 = vmax.f32 %v862_v6, %v1916_v55  ;;  %1268 = vst [vmem:[%s1958_s9 + $0xe0] sm:$0xff] %v1038_v24 }
 0x1e7   : > { %1076 = vst [vmem:[%s2153_s26 + $0x8] sm:$0xff] (%p1377_p4), %v1075_v23  ;;  %v1081_v4 = vld [vmem:[%s1958_s9 + $0x20] sm:$0xff] (%p1377_p4) }
 0x1e8   : > { %v863_v57 = vmax.f32 %v855_v42, %v1909_v29  ;;  %878 = vst [vmem:[%s1958_s9 + $0x38] sm:$0xff] %v870_v1  ;;  %v1079_v29 = vld [vmem:[%s1958_s9 + $0x18] sm:$0xff] (%p1377_p4)  ;;  %v1083_v62 = vld [vmem:[%s1958_s9 + $0x28] sm:$0xff] (%p1377_p4) }
 0x1e9   : > { %1078 = vst [vmem:[%s2153_s26 + $0x10] sm:$0xff] (%p1377_p4), %v1077_v58 }
 0x1ea   : > { %871 = vst [vmem:[%s1958_s9] sm:$0xff] %v863_v57  ;;  %v1015_v53 = vpop.permute.xlu0 %1014 }
 0x1eb   : > { %v1018_v38 = vsel %vm960_vm2, %v1015_v53, %v2011_v59  ;;  %v1019_v31 = vsel %vm960_vm2, %v1013_v28, %v1015_v53  ;;  %1057 = sbr.rel (!%p1377_p4) target bundleno = 510 (0x1fe), region = 32  ;;  %1080 = vst [vmem:[%s2153_s26 + $0x18] sm:$0xff] (%p1377_p4), %v1079_v29  ;;  %v1085_v59 = vld [vmem:[%s1958_s9 + $0x30] sm:$0xff] (%p1377_p4) }
 0x1ec   : > { %v1039_v55 = vmax.f32 %v999_v50, %v1019_v31  ;;  %v1040_v54 = vmax.f32 %v1000_v35, %v1018_v38  ;;  %1082 = vst [vmem:[%s2153_s26 + $0x20] sm:$0xff] (%p1377_p4), %v1081_v4  ;;  %v1127_v13 = vld [vmem:[%s1958_s9 + $0xd8] sm:$0xff] (%p1377_p4) }
 0x1ed   : > { %1084 = vst [vmem:[%s2153_s26 + $0x28] sm:$0xff] (%p1377_p4), %v1083_v62  ;;  %v1129_v9 = vld [vmem:[%s1958_s9 + $0xe0] sm:$0xff] (%p1377_p4) }
 0x1ee   : > { %1269 = vst [vmem:[%s1958_s9 + $0xe8] sm:$0xff] %v1039_v55 }
 0x1ef   : > { %1270 = vst [vmem:[%s1958_s9 + $0xf0] sm:$0xff] %v1040_v54  ;;  %v1087_v46 = vld [vmem:[%s1958_s9 + $0x38] sm:$0xff] (%p1377_p4) }
 0x1f0   : > { %1086 = vst [vmem:[%s2153_s26 + $0x30] sm:$0xff] %v1085_v59 }
 0x1f1   : > { %v1073_v16 = vld [vmem:[%s1958_s9] sm:$0xff]  ;;  %1088 = vst [vmem:[%s2153_s26 + $0x38] sm:$0xff] %v1087_v46 }
 0x1f2   : > { %1074 = vst [vmem:[%s2153_s26] sm:$0xff] %v1073_v16 }
 0x1f3   : > { %1116 = vst [vmem:[%s2153_s26 + $0x128] sm:$0xff] %v1115_v36 }
 0x1f4   : > { %1118 = vst [vmem:[%s2153_s26 + $0x130] sm:$0xff] %v1117_v34 }
 0x1f5   : > { %1120 = vst [vmem:[%s2153_s26 + $0x138] sm:$0xff] %v1119_v32  ;;  %v1131_v19 = vld [vmem:[%s1958_s9 + $0xe8] sm:$0xff] }
 0x1f6   : > { %1122 = vst [vmem:[%s2153_s26 + $0x180] sm:$0xff] %v1121_v60  ;;  %v1133_v33 = vld [vmem:[%s1958_s9 + $0xf0] sm:$0xff] }
 0x1f7   : > { %1124 = vst [vmem:[%s2153_s26 + $0x188] sm:$0xff] %v1123_v3 }
 0x1f8   : > { %1126 = vst [vmem:[%s2153_s26 + $0x190] sm:$0xff] %v1125_v22 }
 0x1f9   : > { %1128 = vst [vmem:[%s2153_s26 + $0x198] sm:$0xff] %v1127_v13 }
 0x1fa   : > { %1130 = vst [vmem:[%s2153_s26 + $0x1a0] sm:$0xff] %v1129_v9 }
 0x1fb   : > { %1132 = vst [vmem:[%s2153_s26 + $0x1a8] sm:$0xff] %v1131_v19 }
 0x1fc   : > { %1134 = vst [vmem:[%s2153_s26 + $0x1b0] sm:$0xff] %v1133_v33 }
 0x1fd   : > { %1136 = vst [vmem:[%s2153_s26 + $0x1b8] sm:$0xff] %v1135_v0 }
 0x1fe PF: > { %p9_p8 = scmp.ge.s32.totalorder %s1367_s13, 4   ;;  %s2277_s9 = smov %s1326_s10 }
 0x1ff   : > { %s2278_s10 = smov %s1375_s16  ;;  %s2279_s11 = smov %s1367_s13 }
 0x200   :  { %11 = sbr.rel (!%p9_p8) target bundleno = 2 (0x2), region = 84 }

</bundles_post_ra>
